<compile_context>
chip_gen: v5e
topology: v5e:2x2
jax: 0.10.0
libtpu: 0.0.40
codegen_flags: <defaults>
</compile_context>

<pallas_src>
import functools

import jax
import jax.numpy as jnp
from jax.experimental import pallas as pl
from jax.experimental.pallas import tpu as pltpu

NEG_SLOPE = 0.01   # nn.LeakyReLU() default
K = 5              # Conv3d kernel_size
PAD = K // 2       # padding='same', stride 1, dilation 1
EPS = 1e-5         # BatchNorm3d default eps


# --------------------- Fused BN + LeakyReLU + Conv3d('same') kernel ---------------------
def _fused_bn_relu_conv_kernel(x_ref, scale_ref, shift_ref, w_ref, b_ref, o_ref, *, depth):
    """Single grid step over the whole batch (rows are (n, d) row-major).

    x_ref:     (N*D, H*W*Cin)         input rows, lane-dense (h, w, c) layout
    scale_ref: (1, H*W*Cin)           BN scale (per-channel values tiled over H*W)
    shift_ref: (1, H*W*Cin)           BN shift
    w_ref:     (K*H*W*Cin, H*W*Cout)  block-Toeplitz conv weight (bf16)
    b_ref:     (1, H*W*Cout)          conv bias (tiled over H*W)
    o_ref:     (N*D, H*W*Cout)        output rows
    """
    nd, hwc = x_ref.shape

    # Fused BatchNorm (scale/shift) + LeakyReLU in f32 on the VPU; one trailing bf16 cast.
    y = x_ref[...] * scale_ref[...] + shift_ref[...]
    y = jnp.where(y >= 0, y, NEG_SLOPE * y)

    # Depth index of each row within its batch element.
    d_idx = jax.lax.broadcasted_iota(jnp.int32, (nd, 1), 0) % depth

    # Depth im2col built as a value: K depth-shifted copies of y, concatenated along lanes.
    # Rows whose shifted depth falls outside [0, depth) are masked to zero ('same' padding
    # along depth; the mask also kills any roll that wrapped across a batch boundary).
    # The H/W 'same' padding is absorbed as zeros inside the Toeplitz weight matrix.
    parts = []
    for kd in range(K):
        s = kd - PAD                                    # depth offset of this tap
        shifted = y if s == 0 else pltpu.roll(y, shift=(-s) % nd, axis=0)
        valid = (d_idx + s >= 0) & (d_idx + s < depth)
        parts.append(jnp.where(valid, shifted, 0.0).astype(jnp.bfloat16))
    patch = jnp.concatenate(parts, axis=-1)             # (N*D, K*H*W*Cin) bf16

    # Single lane-dense MXU matmul (bf16 in, f32 accumulate), then bias add.
    acc = jnp.dot(patch, w_ref[...], preferred_element_type=jnp.float32)
    o_ref[...] = (acc + b_ref[...]).astype(o_ref.dtype)


def _build_toeplitz_weight(w, H, W):
    """(K, K, K, Cin, Cout) conv weight -> (K*H*W*Cin, H*W*Cout) block-Toeplitz matrix.

    Wbig[(kd, h', w', ci), (h, w, co)] = w[kd, h'-h+PAD, w'-w+PAD, ci, co]
    when both offsets are valid kernel taps, else 0 (this encodes the H/W zero padding).
    """
    Kd, Kh, Kw, Cin, Cout = w.shape
    hi = jnp.arange(H)
    wi = jnp.arange(W)
    kh = hi[:, None] - hi[None, :] + PAD                # (H', H)
    kw = wi[:, None] - wi[None, :] + PAD                # (W', W)
    mh = (kh >= 0) & (kh < Kh)
    mw = (kw >= 0) & (kw < Kw)
    g = w[:, jnp.clip(kh, 0, Kh - 1)]                   # (K, H', H, K, Cin, Cout)
    g = g[:, :, :, jnp.clip(kw, 0, Kw - 1)]             # (K, H', H, W', W, Cin, Cout)
    mask = mh[None, :, :, None, None, None, None] & mw[None, None, None, :, :, None, None]
    g = jnp.where(mask, g, 0.0)
    g = jnp.transpose(g, (0, 1, 3, 5, 2, 4, 6))         # (kd, h', w', ci, h, w, co)
    return g.reshape(Kd * H * W * Cin, H * W * Cout)


def b_relu_conv_forward(x_ncdhw, params):
    gamma, beta, w, b = params["gamma"], params["beta"], params["w"], params["b"]
    N, C, D, H, W = x_ncdhw.shape
    Cout = w.shape[-1]
    HWC = H * W * C
    HWO = H * W * Cout
    ND = N * D

    # BatchNorm3d training-mode batch statistics (tiny reduction, plain-JAX glue), folded into
    # per-channel scale/shift and pre-tiled to the lane-dense (H*W*C) layout.
    # TODO(synk): running-stats buffer update (training-mode side effect) is not emitted.
    mean = jnp.mean(x_ncdhw, axis=(0, 2, 3, 4))
    var = jnp.mean((x_ncdhw - mean[None, :, None, None, None]) ** 2, axis=(0, 2, 3, 4))
    scale = gamma / jnp.sqrt(var + EPS)
    shift = beta - mean * scale
    scale_row = jnp.tile(scale, H * W).reshape(1, HWC)
    shift_row = jnp.tile(shift, H * W).reshape(1, HWC)
    bias_row = jnp.tile(b, H * W).reshape(1, HWO)

    # NCDHW -> (N*D, H*W*C): one XLA transpose; the trailing reshape is row-major (layout-free).
    x_rows = jnp.transpose(x_ncdhw, (0, 2, 3, 4, 1)).reshape(ND, HWC)

    w_big = _build_toeplitz_weight(w, H, W).astype(jnp.bfloat16)

    flops = 2 * ND * (K * HWC) * HWO
    bytes_accessed = (ND * HWC * 4           # x rows
                      + K * HWC * HWO * 2    # bf16 Toeplitz weight
                      + ND * HWO * 4         # output rows
                      + 2 * HWC * 4 + HWO * 4)

    kernel = functools.partial(_fused_bn_relu_conv_kernel, depth=D)

    out_rows = pl.pallas_call(
        kernel,
        out_shape=jax.ShapeDtypeStruct((ND, HWO), x_ncdhw.dtype),
        grid_spec=pltpu.PrefetchScalarGridSpec(
            num_scalar_prefetch=0,
            grid=(1,),
            in_specs=[
                pl.BlockSpec((ND, HWC), lambda i: (0, 0)),
                pl.BlockSpec((1, HWC), lambda i: (0, 0)),
                pl.BlockSpec((1, HWC), lambda i: (0, 0)),
                pl.BlockSpec((K * HWC, HWO), lambda i: (0, 0)),
                pl.BlockSpec((1, HWO), lambda i: (0, 0)),
            ],
            out_specs=pl.BlockSpec((ND, HWO), lambda i: (0, 0)),
        ),
        compiler_params=pltpu.CompilerParams(dimension_semantics=("arbitrary",)),
        cost_estimate=pl.CostEstimate(flops=flops, transcendentals=0,
                                      bytes_accessed=bytes_accessed),
    )(x_rows, scale_row, shift_row, w_big, bias_row)

    out = out_rows.reshape(N, D, H, W, Cout)
    return jnp.transpose(out, (0, 4, 1, 2, 3))           # -> NCDHW (matches the PyTorch module)


# --------------------------------- Pure-JAX reference -----------------------------------
def reference_forward(x_ncdhw, params):
    gamma, beta, w, b = params["gamma"], params["beta"], params["w"], params["b"]
    mean = jnp.mean(x_ncdhw, axis=(0, 2, 3, 4), keepdims=True)
    var = jnp.mean((x_ncdhw - mean) ** 2, axis=(0, 2, 3, 4), keepdims=True)
    xn = (x_ncdhw - mean) / jnp.sqrt(var + EPS)
    xn = xn * gamma[None, :, None, None, None] + beta[None, :, None, None, None]
    y = jnp.where(xn >= 0, xn, NEG_SLOPE * xn)
    w_oidhw = jnp.transpose(w, (4, 3, 0, 1, 2))          # (K,K,K,Cin,Cout) -> (Cout,Cin,K,K,K)
    out = jax.lax.conv_general_dilated(
        y, w_oidhw, window_strides=(1, 1, 1), padding="SAME",
        dimension_numbers=("NCDHW", "OIDHW", "NCDHW"),
        precision=jax.lax.Precision.HIGHEST)
    return out + b[None, :, None, None, None]


if __name__ == "__main__":
    dim, out_ch = 4, 8
    N, D, H, W = 2, 8, 8, 8

    key = jax.random.PRNGKey(0)
    k1, k2, k3, k4, k5 = jax.random.split(key, 5)
    x = jax.random.normal(k1, (N, dim, D, H, W), jnp.float32)
    params = {
        "gamma": 1.0 + 0.1 * jax.random.normal(k2, (dim,), jnp.float32),
        "beta": 0.1 * jax.random.normal(k3, (dim,), jnp.float32),
        "w": 0.1 * jax.random.normal(k4, (K, K, K, dim, out_ch), jnp.float32),
        "b": 0.1 * jax.random.normal(k5, (out_ch,), jnp.float32),
    }

    out = jax.block_until_ready(b_relu_conv_forward(x, params))
    assert out.shape == (N, out_ch, D, H, W), out.shape

    ref = jax.block_until_ready(reference_forward(x, params))
    # Kernel uses a bf16-in / f32-accumulate MXU matmul vs. an f32 HIGHEST-precision reference,
    # so allow bf16-level error (effective contraction length 500).
    max_abs = float(jnp.max(jnp.abs(out - ref)))
    l2_rel = float(jnp.linalg.norm(out - ref) / (jnp.linalg.norm(ref) + 1e-12))
    if max_abs > 5e-2 or l2_rel > 1e-2:
        raise RuntimeError(f"mismatch vs reference: max_abs={max_abs:.3e} l2_rel={l2_rel:.3e}")
    print("KERNEL_OK")
</pallas_src>

<mosaic_0001>
module attributes {stable_mosaic.version = 11 : i64} {
  func.func @_fused_bn_relu_conv_kernel(%arg0: i32, %arg1: memref<16x256xf32, #tpu.memory_space<vmem>>, %arg2: memref<1x256xf32, #tpu.memory_space<vmem>>, %arg3: memref<1x256xf32, #tpu.memory_space<vmem>>, %arg4: memref<1280x512xbf16, #tpu.memory_space<vmem>>, %arg5: memref<1x512xf32, #tpu.memory_space<vmem>>, %arg6: memref<16x512xf32, #tpu.memory_space<vmem>>) attributes {dimension_semantics = [#tpu.dimension_semantics<arbitrary>], iteration_bounds = array<i64: 1>, scalar_prefetch = 0 : i64, scratch_operands = 0 : i64, tpu.core_type = #tpu.core_type<tc>, window_params = [{pipeline_mode = #tpu.pipeline_mode<synchronous>, transform_indices = @transform_0, window_bounds = array<i64: 16, 256>}, {pipeline_mode = #tpu.pipeline_mode<synchronous>, transform_indices = @transform_1, window_bounds = array<i64: 1, 256>}, {pipeline_mode = #tpu.pipeline_mode<synchronous>, transform_indices = @transform_2, window_bounds = array<i64: 1, 256>}, {pipeline_mode = #tpu.pipeline_mode<synchronous>, transform_indices = @transform_3, window_bounds = array<i64: 1280, 512>}, {pipeline_mode = #tpu.pipeline_mode<synchronous>, transform_indices = @transform_4, window_bounds = array<i64: 1, 512>}, {pipeline_mode = #tpu.pipeline_mode<synchronous>, transform_indices = @transform_5, window_bounds = array<i64: 16, 512>}]} {
    %c0 = arith.constant 0 : index
    %c0_0 = arith.constant 0 : index
    %0 = vector.load %arg1[%c0, %c0_0] : memref<16x256xf32, #tpu.memory_space<vmem>>, vector<16x256xf32>
    %c0_1 = arith.constant 0 : index
    %c0_2 = arith.constant 0 : index
    %1 = vector.load %arg2[%c0_1, %c0_2] : memref<1x256xf32, #tpu.memory_space<vmem>>, vector<1x256xf32>
    %2 = vector.broadcast %1 : vector<1x256xf32> to vector<16x256xf32>
    %3 = arith.mulf %0, %2 : vector<16x256xf32>
    %c0_3 = arith.constant 0 : index
    %c0_4 = arith.constant 0 : index
    %4 = vector.load %arg3[%c0_3, %c0_4] : memref<1x256xf32, #tpu.memory_space<vmem>>, vector<1x256xf32>
    %5 = vector.broadcast %4 : vector<1x256xf32> to vector<16x256xf32>
    %6 = arith.addf %3, %5 : vector<16x256xf32>
    %cst = arith.constant 0.000000e+00 : f32
    %7 = vector.broadcast %cst : f32 to vector<16x256xf32>
    %8 = arith.cmpf oge, %6, %7 : vector<16x256xf32>
    %cst_5 = arith.constant 0.00999999977 : f32
    %9 = vector.broadcast %cst_5 : f32 to vector<16x256xf32>
    %10 = arith.mulf %9, %6 : vector<16x256xf32>
    %11 = arith.select %8, %6, %10 : vector<16x256xi1>, vector<16x256xf32>
    %12 = tpu.iota {dimensions = array<i32: 0>} : vector<16x1xi32>
    %c8_i32 = arith.constant 8 : i32
    %c0_i32 = arith.constant 0 : i32
    %13 = arith.cmpi eq, %c8_i32, %c0_i32 : i32
    %c1_i32 = arith.constant 1 : i32
    %14 = arith.select %13, %c1_i32, %c8_i32 : i32
    %15 = vector.broadcast %14 : i32 to vector<16x1xi32>
    %16 = arith.remsi %12, %15 : vector<16x1xi32>
    %c0_i32_6 = arith.constant 0 : i32
    %17 = vector.broadcast %c0_i32_6 : i32 to vector<16x1xi32>
    %18 = arith.cmpi ne, %16, %17 : vector<16x1xi32>
    %c0_i32_7 = arith.constant 0 : i32
    %19 = vector.broadcast %c0_i32_7 : i32 to vector<16x1xi32>
    %20 = arith.cmpi slt, %16, %19 : vector<16x1xi32>
    %c0_i32_8 = arith.constant 0 : i32
    %21 = arith.cmpi slt, %14, %c0_i32_8 : i32
    %22 = vector.broadcast %21 : i1 to vector<16x1xi1>
    %23 = vector.broadcast %22 : vector<16x1xi1> to vector<16x1xi1>
    %24 = arith.xori %20, %23 : vector<16x1xi1>
    %25 = arith.andi %24, %18 : vector<16x1xi1>
    %26 = vector.broadcast %14 : i32 to vector<16x1xi32>
    %27 = arith.addi %16, %26 : vector<16x1xi32>
    %28 = arith.select %25, %27, %16 : vector<16x1xi1>, vector<16x1xi32>
    %c2_i32 = arith.constant 2 : i32
    %29 = tpu.dynamic_rotate %11 by %c2_i32 dim 0 : vector<16x256xf32>, i32 -> vector<16x256xf32>
    %c-2_i32 = arith.constant -2 : i32
    %30 = vector.broadcast %c-2_i32 : i32 to vector<16x1xi32>
    %31 = arith.addi %28, %30 : vector<16x1xi32>
    %c0_i32_9 = arith.constant 0 : i32
    %32 = vector.broadcast %c0_i32_9 : i32 to vector<16x1xi32>
    %33 = arith.cmpi sge, %31, %32 : vector<16x1xi32>
    %c-2_i32_10 = arith.constant -2 : i32
    %34 = vector.broadcast %c-2_i32_10 : i32 to vector<16x1xi32>
    %35 = arith.addi %28, %34 : vector<16x1xi32>
    %c8_i32_11 = arith.constant 8 : i32
    %36 = vector.broadcast %c8_i32_11 : i32 to vector<16x1xi32>
    %37 = arith.cmpi slt, %35, %36 : vector<16x1xi32>
    %38 = arith.andi %33, %37 : vector<16x1xi1>
    %cst_12 = arith.constant 0.000000e+00 : f32
    %39 = vector.shape_cast %38 : vector<16x1xi1> to vector<16x1xi1>
    %40 = vector.broadcast %39 : vector<16x1xi1> to vector<16x256xi1>
    %41 = vector.broadcast %cst_12 : f32 to vector<16x256xf32>
    %42 = arith.select %40, %29, %41 : vector<16x256xi1>, vector<16x256xf32>
    %43 = arith.truncf %42 : vector<16x256xf32> to vector<16x256xbf16>
    %c1_i32_13 = arith.constant 1 : i32
    %44 = tpu.dynamic_rotate %11 by %c1_i32_13 dim 0 : vector<16x256xf32>, i32 -> vector<16x256xf32>
    %c-1_i32 = arith.constant -1 : i32
    %45 = vector.broadcast %c-1_i32 : i32 to vector<16x1xi32>
    %46 = arith.addi %28, %45 : vector<16x1xi32>
    %c0_i32_14 = arith.constant 0 : i32
    %47 = vector.broadcast %c0_i32_14 : i32 to vector<16x1xi32>
    %48 = arith.cmpi sge, %46, %47 : vector<16x1xi32>
    %c-1_i32_15 = arith.constant -1 : i32
    %49 = vector.broadcast %c-1_i32_15 : i32 to vector<16x1xi32>
    %50 = arith.addi %28, %49 : vector<16x1xi32>
    %c8_i32_16 = arith.constant 8 : i32
    %51 = vector.broadcast %c8_i32_16 : i32 to vector<16x1xi32>
    %52 = arith.cmpi slt, %50, %51 : vector<16x1xi32>
    %53 = arith.andi %48, %52 : vector<16x1xi1>
    %cst_17 = arith.constant 0.000000e+00 : f32
    %54 = vector.shape_cast %53 : vector<16x1xi1> to vector<16x1xi1>
    %55 = vector.broadcast %54 : vector<16x1xi1> to vector<16x256xi1>
    %56 = vector.broadcast %cst_17 : f32 to vector<16x256xf32>
    %57 = arith.select %55, %44, %56 : vector<16x256xi1>, vector<16x256xf32>
    %58 = arith.truncf %57 : vector<16x256xf32> to vector<16x256xbf16>
    %c0_i32_18 = arith.constant 0 : i32
    %59 = vector.broadcast %c0_i32_18 : i32 to vector<16x1xi32>
    %60 = arith.addi %28, %59 : vector<16x1xi32>
    %c0_i32_19 = arith.constant 0 : i32
    %61 = vector.broadcast %c0_i32_19 : i32 to vector<16x1xi32>
    %62 = arith.cmpi sge, %60, %61 : vector<16x1xi32>
    %c0_i32_20 = arith.constant 0 : i32
    %63 = vector.broadcast %c0_i32_20 : i32 to vector<16x1xi32>
    %64 = arith.addi %28, %63 : vector<16x1xi32>
    %c8_i32_21 = arith.constant 8 : i32
    %65 = vector.broadcast %c8_i32_21 : i32 to vector<16x1xi32>
    %66 = arith.cmpi slt, %64, %65 : vector<16x1xi32>
    %67 = arith.andi %62, %66 : vector<16x1xi1>
    %cst_22 = arith.constant 0.000000e+00 : f32
    %68 = vector.shape_cast %67 : vector<16x1xi1> to vector<16x1xi1>
    %69 = vector.broadcast %68 : vector<16x1xi1> to vector<16x256xi1>
    %70 = vector.broadcast %cst_22 : f32 to vector<16x256xf32>
    %71 = arith.select %69, %11, %70 : vector<16x256xi1>, vector<16x256xf32>
    %72 = arith.truncf %71 : vector<16x256xf32> to vector<16x256xbf16>
    %c15_i32 = arith.constant 15 : i32
    %73 = tpu.dynamic_rotate %11 by %c15_i32 dim 0 : vector<16x256xf32>, i32 -> vector<16x256xf32>
    %c1_i32_23 = arith.constant 1 : i32
    %74 = vector.broadcast %c1_i32_23 : i32 to vector<16x1xi32>
    %75 = arith.addi %28, %74 : vector<16x1xi32>
    %c0_i32_24 = arith.constant 0 : i32
    %76 = vector.broadcast %c0_i32_24 : i32 to vector<16x1xi32>
    %77 = arith.cmpi sge, %75, %76 : vector<16x1xi32>
    %c1_i32_25 = arith.constant 1 : i32
    %78 = vector.broadcast %c1_i32_25 : i32 to vector<16x1xi32>
    %79 = arith.addi %28, %78 : vector<16x1xi32>
    %c8_i32_26 = arith.constant 8 : i32
    %80 = vector.broadcast %c8_i32_26 : i32 to vector<16x1xi32>
    %81 = arith.cmpi slt, %79, %80 : vector<16x1xi32>
    %82 = arith.andi %77, %81 : vector<16x1xi1>
    %cst_27 = arith.constant 0.000000e+00 : f32
    %83 = vector.shape_cast %82 : vector<16x1xi1> to vector<16x1xi1>
    %84 = vector.broadcast %83 : vector<16x1xi1> to vector<16x256xi1>
    %85 = vector.broadcast %cst_27 : f32 to vector<16x256xf32>
    %86 = arith.select %84, %73, %85 : vector<16x256xi1>, vector<16x256xf32>
    %87 = arith.truncf %86 : vector<16x256xf32> to vector<16x256xbf16>
    %c14_i32 = arith.constant 14 : i32
    %88 = tpu.dynamic_rotate %11 by %c14_i32 dim 0 : vector<16x256xf32>, i32 -> vector<16x256xf32>
    %c2_i32_28 = arith.constant 2 : i32
    %89 = vector.broadcast %c2_i32_28 : i32 to vector<16x1xi32>
    %90 = arith.addi %28, %89 : vector<16x1xi32>
    %c0_i32_29 = arith.constant 0 : i32
    %91 = vector.broadcast %c0_i32_29 : i32 to vector<16x1xi32>
    %92 = arith.cmpi sge, %90, %91 : vector<16x1xi32>
    %c2_i32_30 = arith.constant 2 : i32
    %93 = vector.broadcast %c2_i32_30 : i32 to vector<16x1xi32>
    %94 = arith.addi %28, %93 : vector<16x1xi32>
    %c8_i32_31 = arith.constant 8 : i32
    %95 = vector.broadcast %c8_i32_31 : i32 to vector<16x1xi32>
    %96 = arith.cmpi slt, %94, %95 : vector<16x1xi32>
    %97 = arith.andi %92, %96 : vector<16x1xi1>
    %cst_32 = arith.constant 0.000000e+00 : f32
    %98 = vector.shape_cast %97 : vector<16x1xi1> to vector<16x1xi1>
    %99 = vector.broadcast %98 : vector<16x1xi1> to vector<16x256xi1>
    %100 = vector.broadcast %cst_32 : f32 to vector<16x256xf32>
    %101 = arith.select %99, %88, %100 : vector<16x256xi1>, vector<16x256xf32>
    %102 = arith.truncf %101 : vector<16x256xf32> to vector<16x256xbf16>
    %103 = tpu.concatenate %43, %58, %72, %87, %102 in 1 : vector<16x256xbf16>, vector<16x256xbf16>, vector<16x256xbf16>, vector<16x256xbf16>, vector<16x256xbf16> -> vector<16x1280xbf16>
    %c0_33 = arith.constant 0 : index
    %c0_34 = arith.constant 0 : index
    %104 = vector.load %arg4[%c0_33, %c0_34] : memref<1280x512xbf16, #tpu.memory_space<vmem>>, vector<1280x512xbf16>
    %cst_35 = arith.constant dense<0.000000e+00> : vector<16x512xf32>
    %105 = tpu.matmul %103, %104, %cst_35 {dimension_numbers = #tpu.dot_dimension_numbers<[1], [0], [0], [1], [0, 0, 1, 1], [], []>} : vector<16x1280xbf16>, vector<1280x512xbf16>, vector<16x512xf32> -> vector<16x512xf32>
    %c0_36 = arith.constant 0 : index
    %c0_37 = arith.constant 0 : index
    %106 = vector.load %arg5[%c0_36, %c0_37] : memref<1x512xf32, #tpu.memory_space<vmem>>, vector<1x512xf32>
    %107 = vector.broadcast %106 : vector<1x512xf32> to vector<16x512xf32>
    %108 = arith.addf %105, %107 : vector<16x512xf32>
    %c0_38 = arith.constant 0 : index
    %c0_39 = arith.constant 0 : index
    %109 = vector.load %arg6[%c0_38, %c0_39] : memref<16x512xf32, #tpu.memory_space<vmem>>, vector<16x512xf32>
    tpu.vector_store %arg6[%c0_38, %c0_39], %108 {strides = array<i32>} : memref<16x512xf32, #tpu.memory_space<vmem>>, vector<16x512xf32>,
    return
  }
  func.func @transform_0(%arg0: i32) -> (i32, i32) {
    %c0_i32 = arith.constant 0 : i32
    %c0_i32_0 = arith.constant 0 : i32
    %c0_i32_1 = arith.constant 0 : i32
    return %c0_i32, %c0_i32_0 : i32, i32
  }
  func.func @transform_1(%arg0: i32) -> (i32, i32) {
    %c0_i32 = arith.constant 0 : i32
    %c0_i32_0 = arith.constant 0 : i32
    %c0_i32_1 = arith.constant 0 : i32
    return %c0_i32, %c0_i32_0 : i32, i32
  }
  func.func @transform_2(%arg0: i32) -> (i32, i32) {
    %c0_i32 = arith.constant 0 : i32
    %c0_i32_0 = arith.constant 0 : i32
    %c0_i32_1 = arith.constant 0 : i32
    return %c0_i32, %c0_i32_0 : i32, i32
  }
  func.func @transform_3(%arg0: i32) -> (i32, i32) {
    %c0_i32 = arith.constant 0 : i32
    %c0_i32_0 = arith.constant 0 : i32
    %c0_i32_1 = arith.constant 0 : i32
    return %c0_i32, %c0_i32_0 : i32, i32
  }
  func.func @transform_4(%arg0: i32) -> (i32, i32) {
    %c0_i32 = arith.constant 0 : i32
    %c0_i32_0 = arith.constant 0 : i32
    %c0_i32_1 = arith.constant 0 : i32
    return %c0_i32, %c0_i32_0 : i32, i32
  }
  func.func @transform_5(%arg0: i32) -> (i32, i32) {
    %c0_i32 = arith.constant 0 : i32
    %c0_i32_0 = arith.constant 0 : i32
    %c0_i32_1 = arith.constant 0 : i32
    return %c0_i32, %c0_i32_0 : i32, i32
  }
}

</mosaic_0001>

<bundles_post_ra>
// kernel: tpu_custom_call.1
= control target key start
LH: loop header
LB: loop body
LE: loop exit
PB: predicated region body
PF: predicated region fallthrough
CT: control target
= control target key end

     0   :  { %10 = vsyncpa [#allocation3], 0  ;;  %s4981_s0 = inlined_call_operand.hbm [shape: f32[16,256], index: 0, kind: input, shape index: {}]   ;;  %s4982_s1 = inlined_call_operand.hbm [shape: f32[1,256], index: 1, kind: input, shape index: {}]   ;;  %s4983_s2 = inlined_call_operand.hbm [shape: f32[1,256], index: 2, kind: input, shape index: {}]   ;;  %s4984_s3 = inlined_call_operand.hbm [shape: bf16[1280,512], index: 3, kind: input, shape index: {}]   ;;  %s4985_s4 = inlined_call_operand.hbm [shape: f32[1,512], index: 4, kind: input, shape index: {}]   ;;  %s4986_s5 = inlined_call_operand.hbm [shape: f32[16,512], index: 5, kind: output, shape index: {}]  }
   0x1   :  { %11 = vsyncpa [#allocation6], 0 }
   0x2   :  { %12 = vsyncpa [#allocation9], 0  ;;  %s32_s20 = sshll.u32 %s4982_s1, 4  ;;  %s33_s20 = int_to_ptr.hbm [resolvable:$true] %s32_s20 }
   0x3   :  { %13 = vsyncpa [#allocation4], 0  ;;  %s4612_s21 = smov [#allocation5]   ;;  %s53_s25 = sshll.u32 %s4984_s3, 4  ;;  %s54_s25 = int_to_ptr.hbm [resolvable:$true] %s53_s25 }
   0x4   :  { %s34_s22 = sshll.u32 %s4612_s21, 4  ;;  %s4613_s26 = smov [#allocation8]   ;;  %s35_s22 = int_to_ptr.vmem [resolvable:$true] %s34_s22 }
   0x5   :  { %37 = dma.hbm_to_vmem [thread:$0]  %s33_s20, 32, %s35_s22, [#allocation6]  }
   0x6   :  { %s55_s27 = sshll.u32 %s4613_s26, 4  ;;  %s18_s30 = sshll.u32 %s4981_s0, 4  ;;  %s56_s27 = int_to_ptr.vmem [resolvable:$true] %s55_s27  ;;  %s19_s30 = int_to_ptr.hbm [resolvable:$true] %s18_s30 }
   0x7   :  { %s4614_s1 = smov 256   ;;  %s4615_s6 = smov 16  }
   0x8   :  { %61 = dma.hbm_to_vmem [thread:$0]  %s54_s25, 40960, %s56_s27, [#allocation9], %s4614_s1, %s4614_s1, %s4615_s6  }
   0x9   :  { %s43_s9 = sshll.u32 %s4983_s2, 4  ;;  %s4616_s10 = smov [#allocation2]   ;;  %s44_s9 = int_to_ptr.hbm [resolvable:$true] %s43_s9 }
   0xa   :  { %s20_s11 = sshll.u32 %s4616_s10, 4  ;;  %s4617_s3 = smov [#allocation7]   ;;  %s21_s11 = int_to_ptr.vmem [resolvable:$true] %s20_s11 }
   0xb   :  { %26 = dma.hbm_to_vmem [thread:$0]  %s19_s30, 512, %s21_s11, [#allocation3], %s4614_s1, %s4614_s1, %s4615_s6  }
   0xc   :  { %s45_s12 = sshll.u32 %s4617_s3, 4  ;;  %s67_s0 = sshll.u32 %s4985_s4, 4  ;;  %s46_s12 = int_to_ptr.vmem [resolvable:$true] %s45_s12  ;;  %s68_s0 = int_to_ptr.hbm [resolvable:$true] %s67_s0 }
   0xd   :  { %48 = dma.hbm_to_vmem [thread:$0]  %s44_s9, 32, %s46_s12, [#allocation6]  }
   0xe   :  { %s4618_s15 = smov [#allocation10]  }
   0xf   :  { %s69_s16 = sshll.u32 %s4618_s15, 4  ;;  %s70_s16 = int_to_ptr.vmem [resolvable:$true] %s69_s16 }
  0x10   :  { %72 = dma.hbm_to_vmem [thread:$0]  %s68_s0, 64, %s70_s16, [#allocation9]  }
  0x11   :  { %4604 = dma.done.wait [#allocation3], 512  }
  0x12   :  { %4605 = vsyncadd [#allocation3], 4294966784 }
  0x13   :  { %4606 = dma.done.wait [#allocation6], 64  }
  0x14   :  { %4607 = vsyncadd [#allocation6], 4294967232 }
  0x15   :  { %4608 = dma.done.wait [#allocation9], 41024  }
  0x16   :  { %4609 = vsyncadd [#allocation9], 4294926272  ;;  %v2963_v0 = vld [vmem:[#allocation8 + $0xe0] sm:$0xf]  ;;  %v4159_v1 = vld [vmem:[#allocation8 + $0xec] sm:$0xf0] }
  0x17   :  { %v3091_v2 = vld [vmem:[#allocation8 + $0x1e0] sm:$0xf]  ;;  %v2964_v3 = vor.u32 %v4159_v1, %v2963_v0  ;;  %v4191_v4 = vld [vmem:[#allocation8 + $0x1ec] sm:$0xf0]  ;;  %s4619_s2 = smov [#allocation11]   ;;  %s2834_s19 = sshll.u32 %s4986_s5, 4  ;;  %s2835_s19 = int_to_ptr.hbm [resolvable:$true] %s2834_s19 }
  0x18   :  { %v3219_v5 = vld [vmem:[#allocation8 + $0x2e0] sm:$0xf]  ;;  %v4223_v6 = vld [vmem:[#allocation8 + $0x2ec] sm:$0xf0]  ;;  %v3092_v7 = vor.u32 %v4191_v4, %v3091_v2  ;;  %s2832_s4 = sshll.u32 %s4619_s2, 4  ;;  %s4620_s20 = smov 512   ;;  %s2833_s4 = int_to_ptr.vmem [resolvable:$true] %s2832_s4 }
  0x19   :  { %v3220_v8 = vor.u32 %v4223_v6, %v3219_v5  ;;  %v3347_v9 = vld [vmem:[#allocation8 + $0x3e0] sm:$0xf]  ;;  %v4255_v10 = vld [vmem:[#allocation8 + $0x3ec] sm:$0xf0]  ;;  %2260 = vmatpush.bf16.msra.mxu0 %v2964_v3  ;;  %s4621_s21 = smov 32  }
  0x1a   :  { %v2947_v11 = vld [vmem:[#allocation8 + $0xc0] sm:$0xf]  ;;  %v3348_v12 = vor.u32 %v4255_v10, %v3347_v9  ;;  %v4155_v13 = vld [vmem:[#allocation8 + $0xcc] sm:$0xf0]  ;;  %2274 = vmatpush.bf16.msra.mxu1 %v3092_v7 }
  0x1b   :  { %v3075_v14 = vld [vmem:[#allocation8 + $0x1c0] sm:$0xf]  ;;  %v4187_v15 = vld [vmem:[#allocation8 + $0x1cc] sm:$0xf0]  ;;  %2288 = vmatpush.bf16.msra.mxu2 %v3220_v8  ;;  %v2948_v16 = vor.u32 %v4155_v13, %v2947_v11 }
  0x1c   :  { %v3076_v17 = vor.u32 %v4187_v15, %v3075_v14  ;;  %v3203_v18 = vld [vmem:[#allocation8 + $0x2c0] sm:$0xf]  ;;  %v4219_v19 = vld [vmem:[#allocation8 + $0x2cc] sm:$0xf0]  ;;  %2302 = vmatpush.bf16.msra.mxu3 %v3348_v12 }
  0x1d   :  { %v3331_v20 = vld [vmem:[#allocation8 + $0x3c0] sm:$0xf]  ;;  %v3204_v21 = vor.u32 %v4219_v19, %v3203_v18  ;;  %v4251_v22 = vld [vmem:[#allocation8 + $0x3cc] sm:$0xf0]  ;;  %2261 = vmatpush.bf16.msra.mxu0 %v2948_v16 }
  0x1e   :  { %v2931_v23 = vld [vmem:[#allocation8 + $0xa0] sm:$0xf]  ;;  %v4151_v24 = vld [vmem:[#allocation8 + $0xac] sm:$0xf0]  ;;  %v3332_v25 = vor.u32 %v4251_v22, %v3331_v20  ;;  %2275 = vmatpush.bf16.msra.mxu1 %v3076_v17 }
  0x1f   :  { %v3059_v26 = vld [vmem:[#allocation8 + $0x1a0] sm:$0xf]  ;;  %v4183_v27 = vld [vmem:[#allocation8 + $0x1ac] sm:$0xf0]  ;;  %v2932_v29 = vor.u32 %v4151_v24, %v2931_v23  ;;  %2289 = vmatpush.bf16.msra.mxu2 %v3204_v21 }
  0x20   :  { %v3187_v28 = vld [vmem:[#allocation8 + $0x2a0] sm:$0xf]  ;;  %v4215_v30 = vld [vmem:[#allocation8 + $0x2ac] sm:$0xf0]  ;;  %v3060_v33 = vor.u32 %v4183_v27, %v3059_v26  ;;  %2303 = vmatpush.bf16.msra.mxu3 %v3332_v25 }
  0x21   :  { %v3315_v31 = vld [vmem:[#allocation8 + $0x3a0] sm:$0xf]  ;;  %v4247_v32 = vld [vmem:[#allocation8 + $0x3ac] sm:$0xf0]  ;;  %v3188_v34 = vor.u32 %v4215_v30, %v3187_v28  ;;  %2262 = vmatpush.bf16.msra.mxu0 %v2932_v29 }
  0x22   :  { %v2915_v35 = vld [vmem:[#allocation8 + $0x80] sm:$0xf]  ;;  %v4147_v36 = vld [vmem:[#allocation8 + $0x8c] sm:$0xf0]  ;;  %v3316_v38 = vor.u32 %v4247_v32, %v3315_v31  ;;  %2276 = vmatpush.bf16.msra.mxu1 %v3060_v33 }
  0x23   :  { %v3043_v37 = vld [vmem:[#allocation8 + $0x180] sm:$0xf]  ;;  %v4179_v39 = vld [vmem:[#allocation8 + $0x18c] sm:$0xf0]  ;;  %v2916_v44 = vor.u32 %v4147_v36, %v2915_v35  ;;  %2290 = vmatpush.bf16.msra.mxu2 %v3188_v34 }
  0x24   :  { %v3171_v40 = vld [vmem:[#allocation8 + $0x280] sm:$0xf]  ;;  %v4211_v41 = vld [vmem:[#allocation8 + $0x28c] sm:$0xf0]  ;;  %v3044_v45 = vor.u32 %v4179_v39, %v3043_v37  ;;  %2304 = vmatpush.bf16.msra.mxu3 %v3316_v38 }
  0x25   :  { %v3299_v42 = vld [vmem:[#allocation8 + $0x380] sm:$0xf]  ;;  %v4243_v43 = vld [vmem:[#allocation8 + $0x38c] sm:$0xf0]  ;;  %v3172_v46 = vor.u32 %v4211_v41, %v3171_v40  ;;  %2263 = vmatpush.bf16.msra.mxu0 %v2916_v44 }
  0x26   :  { %v2899_v47 = vld [vmem:[#allocation8 + $0x60] sm:$0xf]  ;;  %v4143_v48 = vld [vmem:[#allocation8 + $0x6c] sm:$0xf0]  ;;  %v3300_v50 = vor.u32 %v4243_v43, %v3299_v42  ;;  %2277 = vmatpush.bf16.msra.mxu1 %v3044_v45 }
  0x27   :  { %v3027_v49 = vld [vmem:[#allocation8 + $0x160] sm:$0xf]  ;;  %v4175_v51 = vld [vmem:[#allocation8 + $0x16c] sm:$0xf0]  ;;  %v2900_v56 = vor.u32 %v4143_v48, %v2899_v47  ;;  %2291 = vmatpush.bf16.msra.mxu2 %v3172_v46 }
  0x28   :  { %v3155_v52 = vld [vmem:[#allocation8 + $0x260] sm:$0xf]  ;;  %v4207_v53 = vld [vmem:[#allocation8 + $0x26c] sm:$0xf0]  ;;  %v3028_v57 = vor.u32 %v4175_v51, %v3027_v49  ;;  %2305 = vmatpush.bf16.msra.mxu3 %v3300_v50 }
  0x29   :  { %v3283_v54 = vld [vmem:[#allocation8 + $0x360] sm:$0xf]  ;;  %v4239_v55 = vld [vmem:[#allocation8 + $0x36c] sm:$0xf0]  ;;  %v3156_v58 = vor.u32 %v4207_v53, %v3155_v52  ;;  %2264 = vmatpush.bf16.msra.mxu0 %v2900_v56 }
  0x2a   :  { %v2883_v59 = vld [vmem:[#allocation8 + $0x40] sm:$0xf]  ;;  %v4139_v60 = vld [vmem:[#allocation8 + $0x4c] sm:$0xf0]  ;;  %v3284_v62 = vor.u32 %v4239_v55, %v3283_v54  ;;  %2278 = vmatpush.bf16.msra.mxu1 %v3028_v57  ;;  %v129_v54 = vlaneseq }
  0x2b   :  { %v3011_v61 = vld [vmem:[#allocation8 + $0x140] sm:$0xf]  ;;  %v4171_v63 = vld [vmem:[#allocation8 + $0x14c] sm:$0xf0]  ;;  %v2884_v4 = vor.u32 %v4139_v60, %v2883_v59  ;;  %2292 = vmatpush.bf16.msra.mxu2 %v3156_v58 }
  0x2c   :  { %v3139_v0 = vld [vmem:[#allocation8 + $0x240] sm:$0xf]  ;;  %v4203_v1 = vld [vmem:[#allocation8 + $0x24c] sm:$0xf0]  ;;  %v3012_v6 = vor.u32 %v4171_v63, %v3011_v61  ;;  %2306 = vmatpush.bf16.msra.mxu3 %v3284_v62 }
  0x2d   :  { %v3267_v2 = vld [vmem:[#allocation8 + $0x340] sm:$0xf]  ;;  %v4235_v3 = vld [vmem:[#allocation8 + $0x34c] sm:$0xf0]  ;;  %v3140_v7 = vor.u32 %v4203_v1, %v3139_v0  ;;  %2265 = vmatpush.bf16.msra.mxu0 %v2884_v4 }
  0x2e   :  { %v2867_v5 = vld [vmem:[#allocation8 + $0x20] sm:$0xf]  ;;  %v4135_v8 = vld [vmem:[#allocation8 + $0x2c] sm:$0xf0]  ;;  %v3268_v11 = vor.u32 %v4235_v3, %v3267_v2  ;;  %2279 = vmatpush.bf16.msra.mxu1 %v3012_v6 }
  0x2f   :  { %v2995_v9 = vld [vmem:[#allocation8 + $0x120] sm:$0xf]  ;;  %v4167_v10 = vld [vmem:[#allocation8 + $0x12c] sm:$0xf0]  ;;  %v2868_v18 = vor.u32 %v4135_v8, %v2867_v5  ;;  %2293 = vmatpush.bf16.msra.mxu2 %v3140_v7 }
  0x30   :  { %v3123_v12 = vld [vmem:[#allocation8 + $0x220] sm:$0xf]  ;;  %v4199_v13 = vld [vmem:[#allocation8 + $0x22c] sm:$0xf0]  ;;  %v2996_v23 = vor.u32 %v4167_v10, %v2995_v9  ;;  %2307 = vmatpush.bf16.msra.mxu3 %v3268_v11 }
  0x31   :  { %v3251_v14 = vld [vmem:[#allocation8 + $0x320] sm:$0xf]  ;;  %v4231_v15 = vld [vmem:[#allocation8 + $0x32c] sm:$0xf0]  ;;  %v3124_v24 = vor.u32 %v4199_v13, %v3123_v12  ;;  %2266 = vmatpush.bf16.msra.mxu0 %v2868_v18  ;;  %v94_v13 = vld [vmem:[#allocation2 + $0x8] sm:$0xff] }
  0x32   :  { %v2851_v16 = vld [vmem:[#allocation8] sm:$0xf]  ;;  %v4131_v17 = vld [vmem:[#allocation8 + $0xc] sm:$0xf0]  ;;  %v3252_v29 = vor.u32 %v4231_v15, %v3251_v14  ;;  %2280 = vmatpush.bf16.msra.mxu1 %v2996_v23  ;;  %v4750_v15 = vshrl.u32 %v129_v54, 7 }
  0x33   :  { %v2979_v19 = vld [vmem:[#allocation8 + $0x100] sm:$0xf]  ;;  %v4163_v20 = vld [vmem:[#allocation8 + $0x10c] sm:$0xf0]  ;;  %v2852_v44 = vor.u32 %v4131_v17, %v2851_v16  ;;  %2294 = vmatpush.bf16.msra.mxu2 %v3124_v24 }
  0x34   :  { %v3107_v21 = vld [vmem:[#allocation8 + $0x200] sm:$0xf]  ;;  %v4195_v22 = vld [vmem:[#allocation8 + $0x20c] sm:$0xf0]  ;;  %v2980_v49 = vor.u32 %v4163_v20, %v2979_v19  ;;  %2308 = vmatpush.bf16.msra.mxu3 %v3252_v29  ;;  %v96_v19 = vld [vmem:[#allocation2 + $0x18] sm:$0xff]  ;;  %v4764_v29 = vand.u32 7, %v4750_v15 }
  0x35   :  { %v4667_v25 = vld [vmem:[#allocation8 + $0x300] sm:$0xf]  ;;  %v4227_v26 = vld [vmem:[#allocation8 + $0x30c] sm:$0xf0]  ;;  %v3108_v50 = vor.u32 %v4195_v22, %v3107_v21  ;;  %2267 = vmatpush.bf16.msra.mxu0 %v2852_v44  ;;  %v97_v20 = vld [vmem:[#allocation5] sm:$0x3] }
  0x36   :  { %v3475_v27 = vld [vmem:[#allocation8 + $0x4e0] sm:$0xf]  ;;  %v4287_v28 = vld [vmem:[#allocation8 + $0x4ec] sm:$0xf0]  ;;  %v3236_v55 = vor.u32 %v4227_v26, %v4667_v25  ;;  %2281 = vmatpush.bf16.msra.mxu1 %v2980_v49  ;;  %v107_v21 = vld [vmem:[#allocation7] sm:$0x3] }
  0x37   :  { %v4669_v30 = vld [vmem:[#allocation8 + $0x5e0] sm:$0xf]  ;;  %v4671_v31 = vld [vmem:[#allocation8 + $0x5ec] sm:$0xf0]  ;;  %v3476_v56 = vor.u32 %v4287_v28, %v3475_v27  ;;  %2295 = vmatpush.bf16.msra.mxu2 %v3108_v50  ;;  %v99_v22 = vperm.slane %v97_v20, 0  ;;  %v100_v23 = vperm.slane %v97_v20, 1 }
  0x38   :  { %v4673_v32 = vld [vmem:[#allocation8 + $0x6e0] sm:$0xf]  ;;  %v4675_v33 = vld [vmem:[#allocation8 + $0x6ec] sm:$0xf0]  ;;  %v3604_v60 = vor.u32 %v4671_v31, %v4669_v30  ;;  %2309 = vmatpush.bf16.msra.mxu3 %v3236_v55  ;;  %v109_v24 = vperm.slane %v107_v21, 0  ;;  %v110_v25 = vperm.slane %v107_v21, 1 }
  0x39   :  { %v4677_v34 = vld [vmem:[#allocation8 + $0x7e0] sm:$0xf]  ;;  %v4679_v35 = vld [vmem:[#allocation8 + $0x7ec] sm:$0xf0]  ;;  %v3732_v61 = vor.u32 %v4675_v33, %v4673_v32  ;;  %2316 = vmatpush.bf16.msrb.mxu0 %v3476_v56  ;;  %v131_v28 = vadd.s32 8, %v4750_v15  ;;  %v104_v31 = vmul.f32 %v100_v23, %v94_v13  ;;  %v106_v33 = vmul.f32 %v100_v23, %v96_v19 }
  0x3a   :  { %v4681_v36 = vld [vmem:[#allocation8 + $0x4c0] sm:$0xf]  ;;  %v4683_v37 = vld [vmem:[#allocation8 + $0x4cc] sm:$0xf0]  ;;  %v3860_v62 = vor.u32 %v4679_v35, %v4677_v34  ;;  %2330 = vmatpush.bf16.msrb.mxu1 %v3604_v60  ;;  %vm160_vm0 = vcmp.lt.s32.totalorder %v4750_v15, 2  ;;  %vm187_vm1 = vcmp.lt.s32.totalorder %v4750_v15, 1 }
  0x3b   :  { %v4685_v38 = vld [vmem:[#allocation8 + $0x5c0] sm:$0xf]  ;;  %v4687_v39 = vld [vmem:[#allocation8 + $0x5cc] sm:$0xf0]  ;;  %v3460_v2 = vor.u32 %v4683_v37, %v4681_v36  ;;  %2344 = vmatpush.bf16.msrb.mxu2 %v3732_v61  ;;  %v4770_v36 = vand.u32 7, %v131_v28  ;;  %v165_v37 = vadd.s32 4294967294, %v4764_v29 }
  0x3c   :  { %v4689_v40 = vld [vmem:[#allocation8 + $0x6c0] sm:$0xf]  ;;  %v4691_v41 = vld [vmem:[#allocation8 + $0x6cc] sm:$0xf0]  ;;  %v3588_v3 = vor.u32 %v4687_v39, %v4685_v38  ;;  %2358 = vmatpush.bf16.msrb.mxu3 %v3860_v62  ;;  %v114_v39 = vadd.f32 %v110_v25, %v104_v31  ;;  %vm230_vm10 = vcmp.lt.s32.totalorder %v4750_v15, 7  ;;  %vm257_vm13 = vcmp.lt.s32.totalorder %v4750_v15, 6 }
  0x3d   :  { %v4693_v42 = vld [vmem:[#allocation8 + $0x7c0] sm:$0xf]  ;;  %v4695_v43 = vld [vmem:[#allocation8 + $0x7cc] sm:$0xf0]  ;;  %v3716_v4 = vor.u32 %v4691_v41, %v4689_v40  ;;  %2317 = vmatpush.bf16.msrb.mxu0 %v3460_v2  ;;  %v4776_v41 = vadd.s32 4294967295, %v4764_v29  ;;  %vm167_vm2 = vcmp.ge.s32.totalorder %v165_v37, 0 }
  0x3e   :  { %v4697_v45 = vld [vmem:[#allocation8 + $0x4a0] sm:$0xf]  ;;  %v4699_v46 = vld [vmem:[#allocation8 + $0x4ac] sm:$0xf0]  ;;  %v3844_v5 = vor.u32 %v4695_v43, %v4693_v42  ;;  %2331 = vmatpush.bf16.msrb.mxu1 %v3588_v3  ;;  %v116_v42 = vadd.f32 %v110_v25, %v106_v33  ;;  %v166_v43 = vadd.s32 4294967294, %v4770_v36  ;;  %vm118_vm4 = vcmp.ge.f32.partialorder %v114_v39, 0.0 }
  0x3f   :  { %v4701_v47 = vld [vmem:[#allocation8 + $0x5a0] sm:$0xf]  ;;  %v4703_v48 = vld [vmem:[#allocation8 + $0x5ac] sm:$0xf0]  ;;  %v3444_v9 = vor.u32 %v4699_v46, %v4697_v45  ;;  %2345 = vmatpush.bf16.msrb.mxu2 %v3716_v4  ;;  %v193_v49 = vadd.s32 4294967295, %v4770_v36  ;;  %vm194_vm8 = vcmp.ge.s32.totalorder %v4776_v41, 0 }
  0x40   :  { %v4705_v51 = vld [vmem:[#allocation8 + $0x6a0] sm:$0xf]  ;;  %v4707_v52 = vld [vmem:[#allocation8 + $0x6ac] sm:$0xf0]  ;;  %v3572_v10 = vor.u32 %v4703_v48, %v4701_v47  ;;  %2359 = vmatpush.bf16.msrb.mxu3 %v3844_v5  ;;  %vm120_vm6 = vcmp.ge.f32.partialorder %v116_v42, 0.0  ;;  %vm168_vm7 = vcmp.ge.s32.totalorder %v166_v43, 0 }
  0x41   :  { %v4709_v53 = vld [vmem:[#allocation8 + $0x7a0] sm:$0xf]  ;;  %v4712_v57 = vld [vmem:[#allocation8 + $0x7ac] sm:$0xf0]  ;;  %v3700_v11 = vor.u32 %v4707_v52, %v4705_v51  ;;  %2318 = vmatpush.bf16.msrb.mxu0 %v3444_v9  ;;  %v122_v47 = vmul.f32 0.01, %v114_v39 }
  0x42   :  { %v4714_v58 = vld [vmem:[#allocation8 + $0x480] sm:$0xf]  ;;  %v4716_v59 = vld [vmem:[#allocation8 + $0x48c] sm:$0xf0]  ;;  %v3828_v16 = vor.u32 %v4712_v57, %v4709_v53  ;;  %2332 = vmatpush.bf16.msrb.mxu1 %v3572_v10  ;;  %v124_v50 = vmul.f32 0.01, %v116_v42 }
  0x43   :  { %v4724_v63 = vld [vmem:[#allocation8 + $0x580] sm:$0xf]  ;;  %v4726_v0 = vld [vmem:[#allocation8 + $0x58c] sm:$0xf0]  ;;  %v3428_v17 = vor.u32 %v4716_v59, %v4714_v58  ;;  %2346 = vmatpush.bf16.msrb.mxu2 %v3700_v11  ;;  %v4786_v53 = vsel %vm118_vm4, %v114_v39, %v122_v47  ;;  %vm195_vm9 = vcmp.ge.s32.totalorder %v193_v49, 0 }
  0x44   :  { %v4728_v1 = vld [vmem:[#allocation8 + $0x680] sm:$0xf]  ;;  %v4738_v6 = vld [vmem:[#allocation8 + $0x68c] sm:$0xf0]  ;;  %v3556_v18 = vor.u32 %v4726_v0, %v4724_v63  ;;  %2360 = vmatpush.bf16.msrb.mxu3 %v3828_v16  ;;  %v4794_v61 = vsel %vm120_vm6, %v116_v42, %v124_v50  ;;  %v157_v62 = vrot.slane %v4786_v53, 6  ;;  %v184_v2 = vrot.slane %v4786_v53, 7 }
  0x45   :  { %v4740_v7 = vld [vmem:[#allocation8 + $0x780] sm:$0xf]  ;;  %v4742_v8 = vld [vmem:[#allocation8 + $0x78c] sm:$0xf0]  ;;  %v3684_v26 = vor.u32 %v4738_v6, %v4728_v1  ;;  %2319 = vmatpush.bf16.msrb.mxu0 %v3428_v17  ;;  %v159_v3 = vrot.slane %v4794_v61, 6  ;;  %v186_v5 = vrot.slane %v4794_v61, 7 }
  0x46   :  { %v93_v12 = vld [vmem:[#allocation2] sm:$0xff]  ;;  %v95_v14 = vld [vmem:[#allocation2 + $0x10] sm:$0xff]  ;;  %v3812_v27 = vor.u32 %v4742_v8, %v4740_v7  ;;  %2333 = vmatpush.bf16.msrb.mxu1 %v3556_v18 }
  0x47   :  { %v103_v30 = vmul.f32 %v99_v22, %v93_v12  ;;  %v105_v32 = vmul.f32 %v99_v22, %v95_v14  ;;  %v4766_v34 = vld [vmem:[#allocation8 + $0x460] sm:$0xf]  ;;  %v4768_v35 = vld [vmem:[#allocation8 + $0x46c] sm:$0xf0]  ;;  %2347 = vmatpush.bf16.msrb.mxu2 %v3684_v26  ;;  %v162_v59 = vsel %vm160_vm0, %v157_v62, %v159_v3  ;;  %v164_v63 = vsel %vm160_vm0, %v159_v3, %v157_v62 }
  0x48   :  { %v3412_v44 = vor.u32 %v4768_v35, %v4766_v34  ;;  %v3539_v46 = vld [vmem:[#allocation8 + $0x560] sm:$0xf]  ;;  %v4303_v52 = vld [vmem:[#allocation8 + $0x56c] sm:$0xf0]  ;;  %2361 = vmatpush.bf16.msrb.mxu3 %v3812_v27  ;;  %v178_v14 = vsel %vm167_vm2, %v164_v63, 0.0  ;;  %v180_v16 = vsel %vm168_vm7, %v162_v59, 0.0  ;;  %v189_v8 = vsel %vm187_vm1, %v184_v2, %v186_v5 }
  0x49   :  { %v113_v38 = vadd.f32 %v109_v24, %v103_v30  ;;  %v115_v40 = vadd.f32 %v109_v24, %v105_v32  ;;  %v3667_v57 = vld [vmem:[#allocation8 + $0x660] sm:$0xf]  ;;  %v4335_v60 = vld [vmem:[#allocation8 + $0x66c] sm:$0xf0]  ;;  %v3540_v6 = vor.u32 %v4303_v52, %v3539_v46  ;;  %v191_v22 = vsel %vm187_vm1, %v186_v5, %v184_v2 }
  0x4a   :  { %v3668_v58 = vor.u32 %v4335_v60, %v3667_v57  ;;  %v3795_v12 = vld [vmem:[#allocation8 + $0x760] sm:$0xf]  ;;  %v4367_v13 = vld [vmem:[#allocation8 + $0x76c] sm:$0xf0]  ;;  %2320 = vmatpush.bf16.msrb.mxu0 %v3412_v44  ;;  %v205_v28 = vsel %vm194_vm8, %v191_v22, 0.0  ;;  %v207_v31 = vsel %vm195_vm9, %v189_v8, 0.0 }
  0x4b   :  { %vm117_vm3 = vcmp.ge.f32.partialorder %v113_v38, 0.0  ;;  %vm119_vm5 = vcmp.ge.f32.partialorder %v115_v40, 0.0  ;;  %v121_v45 = vmul.f32 0.01, %v113_v38  ;;  %v123_v48 = vmul.f32 0.01, %v115_v40  ;;  %2334 = vmatpush.bf16.msrb.mxu1 %v3540_v6 }
  0x4c   :  { %v3395_v17 = vld [vmem:[#allocation8 + $0x440] sm:$0xf]  ;;  %v4267_v18 = vld [vmem:[#allocation8 + $0x44c] sm:$0xf0]  ;;  %2348 = vmatpush.bf16.msrb.mxu2 %v3668_v58  ;;  %v3796_v46 = vor.u32 %v4367_v13, %v3795_v12 }
  0x4d   :  { %v4782_v51 = vsel %vm117_vm3, %v113_v38, %v121_v45  ;;  %v4789_v54 = vsel %vm119_vm5, %v115_v40, %v123_v48  ;;  %v4831_v23 = vld [vmem:[#allocation8 + $0x540] sm:$0xf]  ;;  %v4299_v24 = vld [vmem:[#allocation8 + $0x54c] sm:$0xf0]  ;;  %v3396_v49 = vor.u32 %v4267_v18, %v3395_v17 }
  0x4e   :  { %v156_v55 = vrot.slane %v4782_v51, 6  ;;  %v183_v56 = vrot.slane %v4782_v51, 7  ;;  %v158_v1 = vrot.slane %v4789_v54, 6  ;;  %v185_v4 = vrot.slane %v4789_v54, 7  ;;  %v3651_v25 = vld [vmem:[#allocation8 + $0x640] sm:$0xf]  ;;  %2362 = vmatpush.bf16.msrb.mxu3 %v3796_v46 }
  0x4f   :  { %v4331_v26 = vld [vmem:[#allocation8 + $0x64c] sm:$0xf0]  ;;  %v4839_v32 = vld [vmem:[#allocation8 + $0x740] sm:$0xf]  ;;  %2321 = vmatpush.bf16.msrb.mxu0 %v3396_v49  ;;  %v3524_v6 = vor.u32 %v4299_v24, %v4831_v23  ;;  %v226_v24 = vrot.slane %v4782_v51, 1 }
  0x50   :  { %v161_v9 = vsel %vm160_vm0, %v156_v55, %v158_v1  ;;  %v163_v10 = vsel %vm160_vm0, %v158_v1, %v156_v55  ;;  %v188_v7 = vsel %vm187_vm1, %v183_v56, %v185_v4  ;;  %v190_v21 = vsel %vm187_vm1, %v185_v4, %v183_v56  ;;  %v4841_v33 = vld [vmem:[#allocation8 + $0x74c] sm:$0xf0]  ;;  %v3379_v34 = vld [vmem:[#allocation8 + $0x420] sm:$0xf] }
  0x51   :  { %v177_v0 = vsel %vm167_vm2, %v163_v10, 0.0  ;;  %v179_v11 = vsel %vm168_vm7, %v161_v9, 0.0  ;;  %v204_v27 = vsel %vm194_vm8, %v190_v21, 0.0  ;;  %v206_v30 = vsel %vm195_vm9, %v188_v7, 0.0  ;;  %v4263_v35 = vld [vmem:[#allocation8 + $0x42c] sm:$0xf0]  ;;  %2335 = vmatpush.bf16.msrb.mxu1 %v3524_v6 }
  0x52   :  { %v181_v19 = vpack.c.bf16 %v178_v14, %v177_v0  ;;  %v182_v20 = vpack.c.bf16 %v180_v16, %v179_v11  ;;  %v4843_v37 = vld [vmem:[#allocation8 + $0x520] sm:$0xf]  ;;  %v4845_v38 = vld [vmem:[#allocation8 + $0x52c] sm:$0xf0]  ;;  %v208_v41 = vpack.c.bf16 %v205_v28, %v204_v27  ;;  %v209_v42 = vpack.c.bf16 %v207_v31, %v206_v30  ;;  %v4189_v27 = vld [vmem:[#allocation8 + $0x1e4] sm:$0xf] }
  0x53   :  { %v3635_v43 = vld [vmem:[#allocation8 + $0x620] sm:$0xf]  ;;  %v4327_v44 = vld [vmem:[#allocation8 + $0x62c] sm:$0xf0]  ;;  %v3652_v9 = vor.u32 %v4331_v26, %v3651_v25  ;;  %v3780_v0 = vor.u32 %v4841_v33, %v4839_v32  ;;  %v3380_v11 = vor.u32 %v4263_v35, %v3379_v34  ;;  %v3508_v12 = vor.u32 %v4845_v38, %v4843_v37  ;;  %v3093_v28 = vld [vmem:[#allocation8 + $0x1f0] sm:$0xf0] }
  0x54   :  { %v282_v39 = vunpack.c.l.b16 %v181_v19  ;;  %v284_v40 = vunpack.c.l.b16 %v182_v20  ;;  %v4847_v45 = vld [vmem:[#allocation8 + $0x720] sm:$0xf]  ;;  %v283_v47 = vunpack.c.h.b16 %v181_v19  ;;  %v285_v48 = vunpack.c.h.b16 %v182_v20  ;;  %v4849_v50 = vld [vmem:[#allocation8 + $0x72c] sm:$0xf0]  ;;  %v4157_v19 = vld [vmem:[#allocation8 + $0xe4] sm:$0xf] }
  0x55   :  { %v4851_v52 = vld [vmem:[#allocation8 + $0x400] sm:$0xf]  ;;  %v4853_v55 = vld [vmem:[#allocation8 + $0x40c] sm:$0xf0]  ;;  %v292_v57 = vunpack.c.l.b16 %v208_v41  ;;  %v294_v60 = vunpack.c.l.b16 %v209_v42  ;;  %v293_v62 = vunpack.c.h.b16 %v208_v41  ;;  %v295_v5 = vunpack.c.h.b16 %v209_v42  ;;  %2349 = vmatpush.bf16.msrb.mxu2 %v3652_v9  ;;  %v2965_v20 = vld [vmem:[#allocation8 + $0xf0] sm:$0xf0]  ;;  %2322 = vmatpush.bf16.msrb.mxu0 %v3380_v11 }
  0x56   :  { %v4855_v56 = vpack.c.b16 %v284_v40, %v282_v39  ;;  %v4857_v1 = vld [vmem:[#allocation8 + $0x500] sm:$0xf]  ;;  %v4859_v2 = vld [vmem:[#allocation8 + $0x50c] sm:$0xf0]  ;;  %v4863_v4 = vpack.c.b16 %v285_v48, %v283_v47  ;;  %v3636_v8 = vor.u32 %v4327_v44, %v3635_v43  ;;  %v3764_v17 = vor.u32 %v4849_v50, %v4847_v45  ;;  %2363 = vmatpush.bf16.msrb.mxu3 %v3780_v0  ;;  %v4153_v50 = vld [vmem:[#allocation8 + $0xc4] sm:$0xf] }
  0x57   :  { %v4861_v3 = vld [vmem:[#allocation8 + $0x600] sm:$0xf]  ;;  %v4866_v10 = vld [vmem:[#allocation8 + $0x60c] sm:$0xf0]  ;;  %v4873_v63 = vpack.c.b16 %v294_v60, %v292_v57  ;;  %v4882_v7 = vpack.c.b16 %v295_v5, %v293_v62  ;;  %v3364_v21 = vor.u32 %v4853_v55, %v4851_v52  ;;  %v3492_v22 = vor.u32 %v4859_v2, %v4857_v1  ;;  %2336 = vmatpush.bf16.msrb.mxu1 %v3508_v12  ;;  %v2949_v62 = vld [vmem:[#allocation8 + $0xd0] sm:$0xf0] }
  0x58   :  { %v4868_v58 = vld [vmem:[#allocation8 + $0x700] sm:$0xf]  ;;  %v4870_v59 = vld [vmem:[#allocation8 + $0x70c] sm:$0xf0]  ;;  %2268 = vmatmul.bf16.vlgmr.msra.gmra.mxu0 %v4855_v56  ;;  %2282 = vmatmul.bf16.vlgmr.msra.gmra.mxu1 %v4863_v4  ;;  %v3620_v23 = vor.u32 %v4866_v10, %v4861_v3  ;;  %v227_v30 = vrot.slane %v4786_v53, 1  ;;  %v228_v31 = vrot.slane %v4789_v54, 1  ;;  %v2968_v33 = vor.u32 %v4157_v19, %v2965_v20 }
  0x59   :  { %v3987_v13 = vld [vmem:[#allocation8 + $0x8e0] sm:$0xf]  ;;  %v4415_v14 = vld [vmem:[#allocation8 + $0x8ec] sm:$0xf0]  ;;  %2296 = vmatmul.bf16.vlgmr.msra.gmra.mxu2 %v4873_v63  ;;  %2310 = vmatmul.bf16.vlgmr.msra.gmra.mxu3 %v4882_v7  ;;  %v3748_v25 = vor.u32 %v4870_v59, %v4868_v58  ;;  %v224_v34 = vpack.c.bf16 %v4786_v53, %v4782_v51  ;;  %v225_v35 = vpack.c.bf16 %v4794_v61, %v4789_v54  ;;  %v229_v37 = vrot.slane %v4794_v61, 1 }
  0x5a   :  { %v4879_v16 = vld [vmem:[#allocation8 + $0x9e0] sm:$0xf]  ;;  %v4447_v18 = vld [vmem:[#allocation8 + $0x9ec] sm:$0xf0]  ;;  %v3988_v26 = vor.u32 %v4415_v14, %v3987_v13  ;;  %2350 = vmatpush.bf16.msrb.mxu2 %v3636_v8  ;;  %v235_v38 = vadd.s32 1, %v4764_v29  ;;  %v236_v39 = vadd.s32 1, %v4770_v36  ;;  %v3096_v40 = vor.u32 %v4189_v27, %v3093_v28  ;;  %2323 = vmatpush.bf16.msrb.mxu0 %v3364_v21 }
  0x5b   :  { %v4116_v32 = vor.u32 %v4447_v18, %v4879_v16  ;;  %v302_v41 = vunpack.c.l.b16 %v224_v34  ;;  %v231_v42 = vsel %vm230_vm10, %v226_v24, %v228_v31  ;;  %v233_v43 = vsel %vm230_vm10, %v228_v31, %v226_v24  ;;  %v3971_v44 = vld [vmem:[#allocation8 + $0x8c0] sm:$0xf]  ;;  %v4411_v45 = vld [vmem:[#allocation8 + $0x8cc] sm:$0xf0]  ;;  %2364 = vmatpush.bf16.msrb.mxu3 %v3764_v17  ;;  %2337 = vmatpush.bf16.msrb.mxu1 %v3492_v22  ;;  %v4185_v10 = vld [vmem:[#allocation8 + $0x1c4] sm:$0xf] }
  0x5c   :  { %v4099_v46 = vld [vmem:[#allocation8 + $0x9c0] sm:$0xf]  ;;  %v232_v47 = vsel %vm230_vm10, %v227_v30, %v229_v37  ;;  %v234_v48 = vsel %vm230_vm10, %v229_v37, %v227_v30  ;;  %vm239_vm11 = vcmp.lt.s32.totalorder %v235_v38, 8  ;;  %vm240_vm12 = vcmp.lt.s32.totalorder %v236_v39, 8  ;;  %v4443_v49 = vld [vmem:[#allocation8 + $0x9cc] sm:$0xf0] }
  0x5d   :  { %v304_v52 = vunpack.c.l.b16 %v225_v35  ;;  %v247_v55 = vsel %vm239_vm11, %v231_v42, 0.0  ;;  %v248_v57 = vsel %vm239_vm11, %v232_v47, 0.0  ;;  %v249_v60 = vsel %vm240_vm12, %v233_v43, 0.0  ;;  %v3077_v58 = vld [vmem:[#allocation8 + $0x1d0] sm:$0xf0] }
  0x5e   :  { %2372 = vmatpush.bf16.msra.mxu0 %v3988_v26  ;;  %2351 = vmatpush.bf16.msrb.mxu2 %v3620_v23  ;;  %v250_v1 = vsel %vm240_vm12, %v234_v48, 0.0  ;;  %v251_v2 = vpack.c.bf16 %v248_v57, %v247_v55  ;;  %v303_v3 = vunpack.c.h.b16 %v224_v34  ;;  %v305_v5 = vunpack.c.h.b16 %v225_v35  ;;  %v3955_v13 = vld [vmem:[#allocation8 + $0x8a0] sm:$0xf]  ;;  %v4407_v14 = vld [vmem:[#allocation8 + $0x8ac] sm:$0xf0] }
  0x5f   :  { %v252_v6 = vpack.c.bf16 %v250_v1, %v249_v60  ;;  %v3972_v9 = vor.u32 %v4411_v45, %v3971_v44  ;;  %2386 = vmatpush.bf16.msra.mxu1 %v4116_v32  ;;  %v4100_v11 = vor.u32 %v4443_v49, %v4099_v46  ;;  %v2952_v12 = vor.u32 %v4153_v50, %v2949_v62  ;;  %v4083_v18 = vld [vmem:[#allocation8 + $0x9a0] sm:$0xf]  ;;  %v4439_v19 = vld [vmem:[#allocation8 + $0x9ac] sm:$0xf0]  ;;  %v4149_v22 = vld [vmem:[#allocation8 + $0xa4] sm:$0xf] }
  0x60   :  { %v312_v59 = vunpack.c.l.b16 %v251_v2  ;;  %v313_v0 = vunpack.c.h.b16 %v251_v2  ;;  %2365 = vmatpush.bf16.msrb.mxu3 %v3748_v25  ;;  %v4908_v16 = vpack.c.b16 %v304_v52, %v302_v41  ;;  %v4910_v20 = vpack.c.b16 %v305_v5, %v303_v3  ;;  %v2933_v23 = vld [vmem:[#allocation8 + $0xb0] sm:$0xf0]  ;;  %v4181_v27 = vld [vmem:[#allocation8 + $0x1a4] sm:$0xf]  ;;  %v3939_v31 = vld [vmem:[#allocation8 + $0x880] sm:$0xf] }
  0x61   :  { %v314_v8 = vunpack.c.l.b16 %v252_v6  ;;  %v315_v17 = vunpack.c.h.b16 %v252_v6  ;;  %v3080_v21 = vor.u32 %v4185_v10, %v3077_v58  ;;  %v3956_v26 = vor.u32 %v4407_v14, %v3955_v13  ;;  %v3061_v28 = vld [vmem:[#allocation8 + $0x1b0] sm:$0xf0]  ;;  %v4403_v32 = vld [vmem:[#allocation8 + $0x88c] sm:$0xf0]  ;;  %v4067_v34 = vld [vmem:[#allocation8 + $0x980] sm:$0xf] }
  0x62   :  { %2400 = vmatpush.bf16.msra.mxu2 %v2968_v33  ;;  %2373 = vmatpush.bf16.msra.mxu0 %v3972_v9  ;;  %v4084_v30 = vor.u32 %v4439_v19, %v4083_v18  ;;  %v2936_v33 = vor.u32 %v4149_v22, %v2933_v23  ;;  %v4435_v35 = vld [vmem:[#allocation8 + $0x98c] sm:$0xf0]  ;;  %v3064_v37 = vor.u32 %v4181_v27, %v3061_v28  ;;  %v4145_v38 = vld [vmem:[#allocation8 + $0x84] sm:$0xf]  ;;  %v2917_v39 = vld [vmem:[#allocation8 + $0x90] sm:$0xf0] }
  0x63   :  { %v4912_v24 = vpack.c.b16 %v314_v8, %v312_v59  ;;  %v4914_v25 = vpack.c.b16 %v315_v17, %v313_v0  ;;  %2387 = vmatpush.bf16.msra.mxu1 %v4100_v11  ;;  %v4177_v41 = vld [vmem:[#allocation8 + $0x184] sm:$0xf]  ;;  %v3045_v42 = vld [vmem:[#allocation8 + $0x190] sm:$0xf0]  ;;  %v4068_v43 = vor.u32 %v4435_v35, %v4067_v34  ;;  %v3923_v44 = vld [vmem:[#allocation8 + $0x860] sm:$0xf]  ;;  %v2920_v46 = vor.u32 %v4145_v38, %v2917_v39 }
  0x64   :  { %2414 = vmatpush.bf16.msra.mxu3 %v3096_v40  ;;  %v3940_v40 = vor.u32 %v4403_v32, %v3939_v31  ;;  %v4399_v45 = vld [vmem:[#allocation8 + $0x86c] sm:$0xf0]  ;;  %v4051_v47 = vld [vmem:[#allocation8 + $0x960] sm:$0xf]  ;;  %v3048_v49 = vor.u32 %v4177_v41, %v3045_v42  ;;  %v4141_v50 = vld [vmem:[#allocation8 + $0x64] sm:$0xf] }
  0x65   :  { %v4431_v48 = vld [vmem:[#allocation8 + $0x96c] sm:$0xf0]  ;;  %v2901_v52 = vld [vmem:[#allocation8 + $0x70] sm:$0xf0]  ;;  %v4173_v55 = vld [vmem:[#allocation8 + $0x164] sm:$0xf]  ;;  %v3924_v57 = vor.u32 %v4399_v45, %v3923_v44 }
  0x66   :  { %2401 = vmatpush.bf16.msra.mxu2 %v2952_v12  ;;  %2374 = vmatpush.bf16.msra.mxu0 %v3956_v26  ;;  %v3029_v60 = vld [vmem:[#allocation8 + $0x170] sm:$0xf0]  ;;  %v3907_v62 = vld [vmem:[#allocation8 + $0x840] sm:$0xf]  ;;  %v4395_v1 = vld [vmem:[#allocation8 + $0x84c] sm:$0xf0]  ;;  %v4052_v2 = vor.u32 %v4431_v48, %v4051_v47  ;;  %v2904_v6 = vor.u32 %v4141_v50, %v2901_v52 }
  0x67   :  { %2388 = vmatpush.bf16.msra.mxu1 %v4084_v30  ;;  %v4035_v3 = vld [vmem:[#allocation8 + $0x940] sm:$0xf]  ;;  %v4427_v5 = vld [vmem:[#allocation8 + $0x94c] sm:$0xf0]  ;;  %v4137_v9 = vld [vmem:[#allocation8 + $0x44] sm:$0xf]  ;;  %v3032_v59 = vor.u32 %v4173_v55, %v3029_v60  ;;  %v3908_v0 = vor.u32 %v4395_v1, %v3907_v62 }
  0x68   :  { %2324 = vmatmul.bf16.vlgmr.msrb.gmra.mxu0 %v4908_v16  ;;  %2338 = vmatmul.bf16.vlgmr.msrb.gmra.mxu1 %v4910_v20  ;;  %v2885_v10 = vld [vmem:[#allocation8 + $0x50] sm:$0xf0]  ;;  %v4169_v58 = vld [vmem:[#allocation8 + $0x144] sm:$0xf]  ;;  %v3891_v12 = vld [vmem:[#allocation8 + $0x820] sm:$0xf] }
  0x69   :  { %2415 = vmatpush.bf16.msra.mxu3 %v3080_v21  ;;  %2352 = vmatmul.bf16.vlgmr.msrb.gmra.mxu2 %v4912_v24  ;;  %v3013_v11 = vld [vmem:[#allocation8 + $0x150] sm:$0xf0]  ;;  %v253_v13 = vrot.slane %v4782_v51, 2  ;;  %v254_v14 = vrot.slane %v4786_v53, 2  ;;  %v4391_v8 = vld [vmem:[#allocation8 + $0x82c] sm:$0xf0]  ;;  %v4036_v21 = vor.u32 %v4427_v5, %v4035_v3  ;;  %v2888_v22 = vor.u32 %v4137_v9, %v2885_v10 }
  0x6a   :  { %2366 = vmatmul.bf16.vlgmr.msrb.gmra.mxu3 %v4914_v25  ;;  %2402 = vmatpush.bf16.msra.mxu2 %v2936_v33  ;;  %v255_v17 = vrot.slane %v4789_v54, 2  ;;  %v256_v18 = vrot.slane %v4794_v61, 2  ;;  %v262_v19 = vadd.s32 2, %v4764_v29  ;;  %v4019_v23 = vld [vmem:[#allocation8 + $0x920] sm:$0xf]  ;;  %v263_v27 = vadd.s32 2, %v4770_v36 }
  0x6b   :  { %2375 = vmatpush.bf16.msra.mxu0 %v3940_v40  ;;  %2389 = vmatpush.bf16.msra.mxu1 %v4068_v43  ;;  %v4423_v26 = vld [vmem:[#allocation8 + $0x92c] sm:$0xf0]  ;;  %v4133_v51 = vld [vmem:[#allocation8 + $0x24] sm:$0xf]  ;;  %v2869_v53 = vld [vmem:[#allocation8 + $0x30] sm:$0xf0]  ;;  %v3016_v61 = vor.u32 %v4169_v58, %v3013_v11  ;;  %v3892_v15 = vor.u32 %v4391_v8, %v3891_v12 }
  0x6c   :  { %v4165_v28 = vld [vmem:[#allocation8 + $0x124] sm:$0xf]  ;;  %v258_v30 = vsel %vm257_vm13, %v253_v13, %v255_v17  ;;  %v259_v31 = vsel %vm257_vm13, %v254_v14, %v256_v18  ;;  %v260_v54 = vsel %vm257_vm13, %v255_v17, %v253_v13  ;;  %v261_v32 = vsel %vm257_vm13, %v256_v18, %v254_v14  ;;  %v2997_v33 = vld [vmem:[#allocation8 + $0x130] sm:$0xf0]  ;;  %v3875_v29 = vld [vmem:[#allocation8 + $0x800] sm:$0xf] }
  0x6d   :  { %2416 = vmatpush.bf16.msra.mxu3 %v3064_v37  ;;  %vm266_vm14 = vcmp.lt.s32.totalorder %v262_v19, 8  ;;  %vm267_vm15 = vcmp.lt.s32.totalorder %v263_v27, 8  ;;  %v4387_v34 = vld [vmem:[#allocation8 + $0x80c] sm:$0xf0]  ;;  %v4020_v39 = vor.u32 %v4423_v26, %v4019_v23  ;;  %v4003_v40 = vld [vmem:[#allocation8 + $0x900] sm:$0xf]  ;;  %v2872_v45 = vor.u32 %v4133_v51, %v2869_v53 }
  0x6e   :  { %2403 = vmatpush.bf16.msra.mxu2 %v2920_v46  ;;  %v274_v35 = vsel %vm266_vm14, %v258_v30, 0.0  ;;  %v275_v37 = vsel %vm266_vm14, %v259_v31, 0.0  ;;  %v276_v36 = vsel %vm267_vm15, %v260_v54, 0.0  ;;  %v277_v38 = vsel %vm267_vm15, %v261_v32, 0.0  ;;  %v4419_v41 = vld [vmem:[#allocation8 + $0x90c] sm:$0xf0] }
  0x6f   :  { %2376 = vmatpush.bf16.msra.mxu0 %v3924_v57  ;;  %2390 = vmatpush.bf16.msra.mxu1 %v4052_v2  ;;  %v4129_v42 = vld [vmem:[#allocation8 + $0x4] sm:$0xf]  ;;  %v278_v43 = vpack.c.bf16 %v275_v37, %v274_v35  ;;  %v279_v44 = vpack.c.bf16 %v277_v38, %v276_v36  ;;  %v2853_v46 = vld [vmem:[#allocation8 + $0x10] sm:$0xf0]  ;;  %v3876_v57 = vor.u32 %v4387_v34, %v3875_v29 }
  0x70   :  { %v4221_v47 = vld [vmem:[#allocation8 + $0x2e4] sm:$0xf]  ;;  %v3221_v48 = vld [vmem:[#allocation8 + $0x2f0] sm:$0xf0]  ;;  %v4004_v5 = vor.u32 %v4419_v41, %v4003_v40 }
  0x71   :  { %2417 = vmatpush.bf16.msra.mxu3 %v3048_v49  ;;  %v3000_v49 = vor.u32 %v4165_v28, %v2997_v33  ;;  %v4161_v50 = vld [vmem:[#allocation8 + $0x104] sm:$0xf]  ;;  %v3349_v55 = vld [vmem:[#allocation8 + $0x3f0] sm:$0xf0]  ;;  %v322_v2 = vunpack.c.l.b16 %v278_v43  ;;  %v324_v3 = vunpack.c.l.b16 %v279_v44  ;;  %v323_v58 = vunpack.c.h.b16 %v278_v43 }
  0x72   :  { %2404 = vmatpush.bf16.msra.mxu2 %v2904_v6  ;;  %v4253_v52 = vld [vmem:[#allocation8 + $0x3e4] sm:$0xf]  ;;  %v2981_v60 = vld [vmem:[#allocation8 + $0x110] sm:$0xf0]  ;;  %v3224_v6 = vor.u32 %v4221_v47, %v3221_v48 }
  0x73   :  { %2377 = vmatpush.bf16.msra.mxu0 %v3908_v0  ;;  %2391 = vmatpush.bf16.msra.mxu1 %v4036_v21  ;;  %v4285_v62 = vld [vmem:[#allocation8 + $0x4e4] sm:$0xf]  ;;  %v3477_v1 = vld [vmem:[#allocation8 + $0x4f0] sm:$0xf0]  ;;  %v2856_v0 = vor.u32 %v4129_v42, %v2853_v46  ;;  %v3352_v11 = vor.u32 %v4253_v52, %v3349_v55  ;;  %v2984_v14 = vor.u32 %v4161_v50, %v2981_v60 }
  0x74   :  { %v4317_v9 = vld [vmem:[#allocation8 + $0x5e4] sm:$0xf]  ;;  %v3605_v10 = vld [vmem:[#allocation8 + $0x5f0] sm:$0xf0]  ;;  %v3480_v8 = vor.u32 %v4285_v62, %v3477_v1  ;;  %v4927_v21 = vpack.c.b16 %v324_v3, %v322_v2 }
  0x75   :  { %2418 = vmatpush.bf16.msra.mxu3 %v3032_v59  ;;  %v325_v59 = vunpack.c.h.b16 %v279_v44  ;;  %v4217_v12 = vld [vmem:[#allocation8 + $0x2c4] sm:$0xf]  ;;  %v3205_v13 = vld [vmem:[#allocation8 + $0x2d0] sm:$0xf0]  ;;  %v3608_v19 = vor.u32 %v4317_v9, %v3605_v10 }
  0x76   :  { %2405 = vmatpush.bf16.msra.mxu2 %v2888_v22  ;;  %v4249_v17 = vld [vmem:[#allocation8 + $0x3c4] sm:$0xf]  ;;  %v3333_v18 = vld [vmem:[#allocation8 + $0x3d0] sm:$0xf0]  ;;  %v3208_v27 = vor.u32 %v4217_v12, %v3205_v13 }
  0x77   :  { %2378 = vmatpush.bf16.msra.mxu0 %v3892_v15  ;;  %2392 = vmatpush.bf16.msra.mxu1 %v4020_v39  ;;  %v4281_v22 = vld [vmem:[#allocation8 + $0x4c4] sm:$0xf]  ;;  %v3461_v23 = vld [vmem:[#allocation8 + $0x4d0] sm:$0xf0]  ;;  %v4929_v26 = vpack.c.b16 %v325_v59, %v323_v58  ;;  %v3336_v28 = vor.u32 %v4249_v17, %v3333_v18 }
  0x78   :  { %v4313_v51 = vld [vmem:[#allocation8 + $0x5c4] sm:$0xf]  ;;  %v3589_v53 = vld [vmem:[#allocation8 + $0x5d0] sm:$0xf0]  ;;  %v3464_v54 = vor.u32 %v4281_v22, %v3461_v23 }
  0x79   :  { %2419 = vmatpush.bf16.msra.mxu3 %v3016_v61  ;;  %v4213_v30 = vld [vmem:[#allocation8 + $0x2a4] sm:$0xf]  ;;  %v3189_v31 = vld [vmem:[#allocation8 + $0x2b0] sm:$0xf0]  ;;  %v3592_v15 = vor.u32 %v4313_v51, %v3589_v53 }
  0x7a   :  { %2406 = vmatpush.bf16.msra.mxu2 %v2872_v45  ;;  %v4245_v32 = vld [vmem:[#allocation8 + $0x3a4] sm:$0xf]  ;;  %v3317_v61 = vld [vmem:[#allocation8 + $0x3b0] sm:$0xf0]  ;;  %v3192_v34 = vor.u32 %v4213_v30, %v3189_v31 }
  0x7b   :  { %2379 = vmatpush.bf16.msra.mxu0 %v3876_v57  ;;  %2393 = vmatpush.bf16.msra.mxu1 %v4004_v5  ;;  %v4277_v33 = vld [vmem:[#allocation8 + $0x4a4] sm:$0xf]  ;;  %v3445_v29 = vld [vmem:[#allocation8 + $0x4b0] sm:$0xf0]  ;;  %v3320_v36 = vor.u32 %v4245_v32, %v3317_v61 }
  0x7c   :  { %v4309_v35 = vld [vmem:[#allocation8 + $0x5a4] sm:$0xf]  ;;  %v3573_v37 = vld [vmem:[#allocation8 + $0x5b0] sm:$0xf0]  ;;  %v3448_v40 = vor.u32 %v4277_v33, %v3445_v29 }
  0x7d   :  { %2420 = vmatpush.bf16.msra.mxu3 %v3000_v49  ;;  %v4209_v38 = vld [vmem:[#allocation8 + $0x284] sm:$0xf]  ;;  %v3173_v39 = vld [vmem:[#allocation8 + $0x290] sm:$0xf0]  ;;  %v3576_v43 = vor.u32 %v4309_v35, %v3573_v37 }
  0x7e   :  { %2407 = vmatpush.bf16.msra.mxu2 %v2856_v0  ;;  %2380 = vmatmul.bf16.vlgmr.msra.gmra.mxu0 %v4927_v21  ;;  %v4241_v41 = vld [vmem:[#allocation8 + $0x384] sm:$0xf]  ;;  %v3301_v42 = vld [vmem:[#allocation8 + $0x390] sm:$0xf0]  ;;  %v3176_v46 = vor.u32 %v4209_v38, %v3173_v39 }
  0x7f   :  { %2428 = vmatpush.bf16.msrb.mxu0 %v3224_v6  ;;  %2442 = vmatpush.bf16.msrb.mxu1 %v3352_v11  ;;  %v4273_v44 = vld [vmem:[#allocation8 + $0x484] sm:$0xf]  ;;  %v3429_v45 = vld [vmem:[#allocation8 + $0x490] sm:$0xf0]  ;;  %v3304_v49 = vor.u32 %v4241_v41, %v3301_v42 }
  0x80   :  { %2394 = vmatmul.bf16.vlgmr.msra.gmra.mxu1 %v4929_v26  ;;  %v4305_v47 = vld [vmem:[#allocation8 + $0x584] sm:$0xf]  ;;  %v3557_v48 = vld [vmem:[#allocation8 + $0x590] sm:$0xf0]  ;;  %v3432_v55 = vor.u32 %v4273_v44, %v3429_v45 }
  0x81   :  { %2421 = vmatpush.bf16.msra.mxu3 %v2984_v14  ;;  %2408 = vmatmul.bf16.vlgmr.msra.gmra.mxu2 %v4855_v56  ;;  %v4205_v50 = vld [vmem:[#allocation8 + $0x264] sm:$0xf]  ;;  %v3157_v52 = vld [vmem:[#allocation8 + $0x270] sm:$0xf0]  ;;  %v3560_v62 = vor.u32 %v4305_v47, %v3557_v48 }
  0x82   :  { %2456 = vmatpush.bf16.msrb.mxu2 %v3480_v8  ;;  %v4237_v57 = vld [vmem:[#allocation8 + $0x364] sm:$0xf]  ;;  %v3285_v60 = vld [vmem:[#allocation8 + $0x370] sm:$0xf0]  ;;  %v3160_v3 = vor.u32 %v4205_v50, %v3157_v52 }
  0x83   :  { %2429 = vmatpush.bf16.msrb.mxu0 %v3208_v27  ;;  %2443 = vmatpush.bf16.msrb.mxu1 %v3336_v28  ;;  %v4269_v1 = vld [vmem:[#allocation8 + $0x464] sm:$0xf]  ;;  %v3413_v2 = vld [vmem:[#allocation8 + $0x470] sm:$0xf0]  ;;  %v3288_v9 = vor.u32 %v4237_v57, %v3285_v60 }
  0x84   :  { %2422 = vmatmul.bf16.vlgmr.msra.gmra.mxu3 %v4863_v4  ;;  %v4301_v5 = vld [vmem:[#allocation8 + $0x564] sm:$0xf]  ;;  %v3541_v6 = vld [vmem:[#allocation8 + $0x570] sm:$0xf0]  ;;  %v3416_v59 = vor.u32 %v4269_v1, %v3413_v2 }
  0x85   :  { %2470 = vmatpush.bf16.msrb.mxu3 %v3608_v19  ;;  %v4201_v10 = vld [vmem:[#allocation8 + $0x244] sm:$0xf]  ;;  %v3141_v58 = vld [vmem:[#allocation8 + $0x250] sm:$0xf0]  ;;  %v3544_v12 = vor.u32 %v4301_v5, %v3541_v6 }
  0x86   :  { %2457 = vmatpush.bf16.msrb.mxu2 %v3464_v54  ;;  %v4233_v0 = vld [vmem:[#allocation8 + $0x344] sm:$0xf]  ;;  %v3269_v11 = vld [vmem:[#allocation8 + $0x350] sm:$0xf0]  ;;  %v3144_v8 = vor.u32 %v4201_v10, %v3141_v58 }
  0x87   :  { %2430 = vmatpush.bf16.msrb.mxu0 %v3192_v34  ;;  %2444 = vmatpush.bf16.msrb.mxu1 %v3320_v36  ;;  %v4265_v13 = vld [vmem:[#allocation8 + $0x444] sm:$0xf]  ;;  %v3397_v14 = vld [vmem:[#allocation8 + $0x450] sm:$0xf0]  ;;  %v3272_v19 = vor.u32 %v4233_v0, %v3269_v11 }
  0x88   :  { %v4297_v17 = vld [vmem:[#allocation8 + $0x544] sm:$0xf]  ;;  %v3525_v18 = vld [vmem:[#allocation8 + $0x550] sm:$0xf0]  ;;  %v3400_v27 = vor.u32 %v4265_v13, %v3397_v14 }
  0x89   :  { %2471 = vmatpush.bf16.msrb.mxu3 %v3592_v15  ;;  %v4197_v22 = vld [vmem:[#allocation8 + $0x224] sm:$0xf]  ;;  %v3125_v23 = vld [vmem:[#allocation8 + $0x230] sm:$0xf0]  ;;  %v3528_v28 = vor.u32 %v4297_v17, %v3525_v18 }
  0x8a   :  { %2458 = vmatpush.bf16.msrb.mxu2 %v3448_v40  ;;  %v4229_v51 = vld [vmem:[#allocation8 + $0x324] sm:$0xf]  ;;  %v3253_v53 = vld [vmem:[#allocation8 + $0x330] sm:$0xf0]  ;;  %v3128_v32 = vor.u32 %v4197_v22, %v3125_v23 }
  0x8b   :  { %2431 = vmatpush.bf16.msrb.mxu0 %v3176_v46  ;;  %2445 = vmatpush.bf16.msrb.mxu1 %v3304_v49  ;;  %v4261_v30 = vld [vmem:[#allocation8 + $0x424] sm:$0xf]  ;;  %v3381_v31 = vld [vmem:[#allocation8 + $0x430] sm:$0xf0]  ;;  %v3256_v29 = vor.u32 %v4229_v51, %v3253_v53 }
  0x8c   :  { %v4293_v54 = vld [vmem:[#allocation8 + $0x524] sm:$0xf]  ;;  %v3509_v61 = vld [vmem:[#allocation8 + $0x530] sm:$0xf0]  ;;  %v3384_v36 = vor.u32 %v4261_v30, %v3381_v31 }
  0x8d   :  { %2472 = vmatpush.bf16.msrb.mxu3 %v3576_v43  ;;  %v4193_v15 = vld [vmem:[#allocation8 + $0x204] sm:$0xf]  ;;  %v3109_v33 = vld [vmem:[#allocation8 + $0x210] sm:$0xf0]  ;;  %v3512_v41 = vor.u32 %v4293_v54, %v3509_v61 }
  0x8e   :  { %2459 = vmatpush.bf16.msrb.mxu2 %v3432_v55  ;;  %v4225_v34 = vld [vmem:[#allocation8 + $0x304] sm:$0xf]  ;;  %v3237_v35 = vld [vmem:[#allocation8 + $0x310] sm:$0xf0]  ;;  %v3112_v45 = vor.u32 %v4193_v15, %v3109_v33 }
  0x8f   :  { %2432 = vmatpush.bf16.msrb.mxu0 %v3160_v3  ;;  %2446 = vmatpush.bf16.msrb.mxu1 %v3288_v9  ;;  %v4257_v37 = vld [vmem:[#allocation8 + $0x404] sm:$0xf]  ;;  %v3365_v38 = vld [vmem:[#allocation8 + $0x410] sm:$0xf0]  ;;  %v3240_v49 = vor.u32 %v4225_v34, %v3237_v35 }
  0x90   :  { %v4349_v39 = vld [vmem:[#allocation8 + $0x6e4] sm:$0xf]  ;;  %v3733_v40 = vld [vmem:[#allocation8 + $0x6f0] sm:$0xf0]  ;;  %v3368_v57 = vor.u32 %v4257_v37, %v3365_v38 }
  0x91   :  { %2473 = vmatpush.bf16.msrb.mxu3 %v3560_v62  ;;  %v4289_v42 = vld [vmem:[#allocation8 + $0x504] sm:$0xf]  ;;  %v3861_v44 = vld [vmem:[#allocation8 + $0x7f0] sm:$0xf0]  ;;  %v3736_v50 = vor.u32 %v4349_v39, %v3733_v40 }
  0x92   :  { %2460 = vmatpush.bf16.msrb.mxu2 %v3416_v59  ;;  %v4381_v43 = vld [vmem:[#allocation8 + $0x7e4] sm:$0xf]  ;;  %v3493_v46 = vld [vmem:[#allocation8 + $0x510] sm:$0xf0] }
  0x93   :  { %2433 = vmatpush.bf16.msrb.mxu0 %v3144_v8  ;;  %2447 = vmatpush.bf16.msrb.mxu1 %v3272_v19  ;;  %v4413_v47 = vld [vmem:[#allocation8 + $0x8e4] sm:$0xf]  ;;  %v3989_v48 = vld [vmem:[#allocation8 + $0x8f0] sm:$0xf0]  ;;  %v3864_v60 = vor.u32 %v4381_v43, %v3861_v44  ;;  %v3496_v62 = vor.u32 %v4289_v42, %v3493_v46 }
  0x94   :  { %v4445_v52 = vld [vmem:[#allocation8 + $0x9e4] sm:$0xf]  ;;  %v4117_v55 = vld [vmem:[#allocation8 + $0x9f0] sm:$0xf0]  ;;  %v3992_v1 = vor.u32 %v4413_v47, %v3989_v48 }
  0x95   :  { %2474 = vmatpush.bf16.msrb.mxu3 %v3544_v12  ;;  %v4345_v2 = vld [vmem:[#allocation8 + $0x6c4] sm:$0xf]  ;;  %v3717_v3 = vld [vmem:[#allocation8 + $0x6d0] sm:$0xf0]  ;;  %v4120_v6 = vor.u32 %v4445_v52, %v4117_v55 }
  0x96   :  { %2461 = vmatpush.bf16.msrb.mxu2 %v3400_v27  ;;  %v4377_v5 = vld [vmem:[#allocation8 + $0x7c4] sm:$0xf]  ;;  %v3845_v9 = vld [vmem:[#allocation8 + $0x7d0] sm:$0xf0]  ;;  %v3720_v11 = vor.u32 %v4345_v2, %v3717_v3 }
  0x97   :  { %2434 = vmatpush.bf16.msrb.mxu0 %v3128_v32  ;;  %2448 = vmatpush.bf16.msrb.mxu1 %v3256_v29  ;;  %v4409_v10 = vld [vmem:[#allocation8 + $0x8c4] sm:$0xf]  ;;  %v3973_v58 = vld [vmem:[#allocation8 + $0x8d0] sm:$0xf0]  ;;  %v3848_v12 = vor.u32 %v4377_v5, %v3845_v9 }
  0x98   :  { %v4441_v59 = vld [vmem:[#allocation8 + $0x9c4] sm:$0xf]  ;;  %v4101_v0 = vld [vmem:[#allocation8 + $0x9d0] sm:$0xf0]  ;;  %v3976_v13 = vor.u32 %v4409_v10, %v3973_v58 }
  0x99   :  { %2475 = vmatpush.bf16.msrb.mxu3 %v3528_v28  ;;  %v4341_v14 = vld [vmem:[#allocation8 + $0x6a4] sm:$0xf]  ;;  %v3701_v8 = vld [vmem:[#allocation8 + $0x6b0] sm:$0xf0]  ;;  %v4104_v18 = vor.u32 %v4441_v59, %v4101_v0 }
  0x9a   :  { %2462 = vmatpush.bf16.msrb.mxu2 %v3384_v36  ;;  %v4373_v17 = vld [vmem:[#allocation8 + $0x7a4] sm:$0xf]  ;;  %v3829_v19 = vld [vmem:[#allocation8 + $0x7b0] sm:$0xf0]  ;;  %v3704_v53 = vor.u32 %v4341_v14, %v3701_v8 }
  0x9b   :  { %2435 = vmatpush.bf16.msrb.mxu0 %v3112_v45  ;;  %2449 = vmatpush.bf16.msrb.mxu1 %v3240_v49  ;;  %v4405_v22 = vld [vmem:[#allocation8 + $0x8a4] sm:$0xf]  ;;  %v3957_v23 = vld [vmem:[#allocation8 + $0x8b0] sm:$0xf0]  ;;  %v3832_v28 = vor.u32 %v4373_v17, %v3829_v19 }
  0x9c   :  { %v4437_v27 = vld [vmem:[#allocation8 + $0x9a4] sm:$0xf]  ;;  %v4085_v51 = vld [vmem:[#allocation8 + $0x9b0] sm:$0xf0]  ;;  %v3960_v30 = vor.u32 %v4405_v22, %v3957_v23 }
  0x9d   :  { %2476 = vmatpush.bf16.msrb.mxu3 %v3512_v41  ;;  %v4337_v31 = vld [vmem:[#allocation8 + $0x684] sm:$0xf]  ;;  %v3685_v54 = vld [vmem:[#allocation8 + $0x690] sm:$0xf0]  ;;  %v4088_v61 = vor.u32 %v4437_v27, %v4085_v51 }
  0x9e   :  { %2463 = vmatpush.bf16.msrb.mxu2 %v3368_v57  ;;  %2436 = vmatmul.bf16.vlgmr.msrb.gmra.mxu0 %v4873_v63  ;;  %v4369_v32 = vld [vmem:[#allocation8 + $0x784] sm:$0xf]  ;;  %v3813_v15 = vld [vmem:[#allocation8 + $0x790] sm:$0xf0]  ;;  %v3688_v37 = vor.u32 %v4337_v31, %v3685_v54 }
  0x9f   :  { %2484 = vmatpush.bf16.msra.mxu0 %v3736_v50  ;;  %2498 = vmatpush.bf16.msra.mxu1 %v3864_v60  ;;  %v4401_v33 = vld [vmem:[#allocation8 + $0x884] sm:$0xf]  ;;  %v3941_v29 = vld [vmem:[#allocation8 + $0x890] sm:$0xf0]  ;;  %v3816_v36 = vor.u32 %v4369_v32, %v3813_v15  ;;  %v4160_v15 = vld [vmem:[#allocation8 + $0xf4] sm:$0xf0] }
  0xa0   :  { %2450 = vmatmul.bf16.vlgmr.msrb.gmra.mxu1 %v4882_v7  ;;  %v4433_v34 = vld [vmem:[#allocation8 + $0x984] sm:$0xf]  ;;  %v4069_v35 = vld [vmem:[#allocation8 + $0x990] sm:$0xf0]  ;;  %v3944_v38 = vor.u32 %v4401_v33, %v3941_v29  ;;  %v3099_v33 = vld [vmem:[#allocation8 + $0x1e8] sm:$0xf] }
  0xa1   :  { %2477 = vmatpush.bf16.msrb.mxu3 %v3496_v62  ;;  %2464 = vmatmul.bf16.vlgmr.msrb.gmra.mxu2 %v4908_v16  ;;  %v4333_v39 = vld [vmem:[#allocation8 + $0x664] sm:$0xf]  ;;  %v3669_v40 = vld [vmem:[#allocation8 + $0x670] sm:$0xf0]  ;;  %v4072_v42 = vor.u32 %v4433_v34, %v4069_v35  ;;  %v4192_v34 = vld [vmem:[#allocation8 + $0x1f4] sm:$0xf0] }
  0xa2   :  { %2512 = vmatpush.bf16.msra.mxu2 %v3992_v1  ;;  %v4365_v41 = vld [vmem:[#allocation8 + $0x764] sm:$0xf]  ;;  %v3797_v43 = vld [vmem:[#allocation8 + $0x770] sm:$0xf0]  ;;  %v3672_v48 = vor.u32 %v4333_v39, %v3669_v40  ;;  %v3227_v35 = vld [vmem:[#allocation8 + $0x2e8] sm:$0xf] }
  0xa3   :  { %2485 = vmatpush.bf16.msra.mxu0 %v3720_v11  ;;  %2499 = vmatpush.bf16.msra.mxu1 %v3848_v12  ;;  %v4397_v44 = vld [vmem:[#allocation8 + $0x864] sm:$0xf]  ;;  %v3925_v45 = vld [vmem:[#allocation8 + $0x870] sm:$0xf0]  ;;  %v3800_v49 = vor.u32 %v4365_v41, %v3797_v43  ;;  %v3355_v39 = vld [vmem:[#allocation8 + $0x3e8] sm:$0xf]  ;;  %v3100_v43 = vor.u32 %v4192_v34, %v3099_v33 }
  0xa4   :  { %2478 = vmatmul.bf16.vlgmr.msrb.gmra.mxu3 %v4910_v20  ;;  %v4429_v46 = vld [vmem:[#allocation8 + $0x964] sm:$0xf]  ;;  %v4053_v47 = vld [vmem:[#allocation8 + $0x970] sm:$0xf0]  ;;  %v3928_v50 = vor.u32 %v4397_v44, %v3925_v45  ;;  %v4256_v40 = vld [vmem:[#allocation8 + $0x3f4] sm:$0xf0] }
  0xa5   :  { %2526 = vmatpush.bf16.msra.mxu3 %v4120_v6  ;;  %v4329_v52 = vld [vmem:[#allocation8 + $0x644] sm:$0xf]  ;;  %v3653_v55 = vld [vmem:[#allocation8 + $0x650] sm:$0xf0]  ;;  %v4056_v60 = vor.u32 %v4429_v46, %v4053_v47  ;;  %v2955_v45 = vld [vmem:[#allocation8 + $0xc8] sm:$0xf] }
  0xa6   :  { %2513 = vmatpush.bf16.msra.mxu2 %v3976_v13  ;;  %v4361_v57 = vld [vmem:[#allocation8 + $0x744] sm:$0xf]  ;;  %v3781_v62 = vld [vmem:[#allocation8 + $0x750] sm:$0xf0]  ;;  %v3656_v6 = vor.u32 %v4329_v52, %v3653_v55  ;;  %v4156_v46 = vld [vmem:[#allocation8 + $0xd4] sm:$0xf0] }
  0xa7   :  { %2486 = vmatpush.bf16.msra.mxu0 %v3704_v53  ;;  %2500 = vmatpush.bf16.msra.mxu1 %v3832_v28  ;;  %v4393_v1 = vld [vmem:[#allocation8 + $0x844] sm:$0xf]  ;;  %v3909_v2 = vld [vmem:[#allocation8 + $0x850] sm:$0xf0]  ;;  %v3784_v9 = vor.u32 %v4361_v57, %v3781_v62  ;;  %v3083_v47 = vld [vmem:[#allocation8 + $0x1c8] sm:$0xf] }
  0xa8   :  { %v4425_v3 = vld [vmem:[#allocation8 + $0x944] sm:$0xf]  ;;  %v4037_v5 = vld [vmem:[#allocation8 + $0x950] sm:$0xf0]  ;;  %v3912_v10 = vor.u32 %v4393_v1, %v3909_v2  ;;  %v4220_v52 = vld [vmem:[#allocation8 + $0x2d4] sm:$0xf0] }
  0xa9   :  { %2527 = vmatpush.bf16.msra.mxu3 %v4104_v18  ;;  %v4325_v58 = vld [vmem:[#allocation8 + $0x624] sm:$0xf]  ;;  %v3637_v59 = vld [vmem:[#allocation8 + $0x630] sm:$0xf0]  ;;  %v4040_v11 = vor.u32 %v4425_v3, %v4037_v5  ;;  %v3339_v55 = vld [vmem:[#allocation8 + $0x3c8] sm:$0xf] }
  0xaa   :  { %2514 = vmatpush.bf16.msra.mxu2 %v3960_v30  ;;  %v4357_v0 = vld [vmem:[#allocation8 + $0x724] sm:$0xf]  ;;  %v3765_v12 = vld [vmem:[#allocation8 + $0x730] sm:$0xf0]  ;;  %v3640_v18 = vor.u32 %v4325_v58, %v3637_v59  ;;  %v4252_v57 = vld [vmem:[#allocation8 + $0x3d4] sm:$0xf0] }
  0xab   :  { %2487 = vmatpush.bf16.msra.mxu0 %v3688_v37  ;;  %2501 = vmatpush.bf16.msra.mxu1 %v3816_v36  ;;  %v4389_v13 = vld [vmem:[#allocation8 + $0x824] sm:$0xf]  ;;  %v3893_v14 = vld [vmem:[#allocation8 + $0x830] sm:$0xf0]  ;;  %v3768_v23 = vor.u32 %v4357_v0, %v3765_v12  ;;  %v4224_v37 = vld [vmem:[#allocation8 + $0x2f4] sm:$0xf0] }
  0xac   :  { %v4421_v8 = vld [vmem:[#allocation8 + $0x924] sm:$0xf]  ;;  %v4021_v17 = vld [vmem:[#allocation8 + $0x930] sm:$0xf0]  ;;  %v3896_v27 = vor.u32 %v4389_v13, %v3893_v14  ;;  %v3228_v44 = vor.u32 %v4224_v37, %v3227_v35  ;;  %v2939_v2 = vld [vmem:[#allocation8 + $0xa8] sm:$0xf] }
  0xad   :  { %2528 = vmatpush.bf16.msra.mxu3 %v4088_v61  ;;  %v4321_v19 = vld [vmem:[#allocation8 + $0x604] sm:$0xf]  ;;  %v3621_v22 = vld [vmem:[#allocation8 + $0x610] sm:$0xf0]  ;;  %v4024_v30 = vor.u32 %v4421_v8, %v4021_v17  ;;  %v2971_v61 = vld [vmem:[#allocation8 + $0xe8] sm:$0xf] }
  0xae   :  { %2515 = vmatpush.bf16.msra.mxu2 %v3944_v38  ;;  %v4353_v51 = vld [vmem:[#allocation8 + $0x704] sm:$0xf]  ;;  %v3749_v53 = vld [vmem:[#allocation8 + $0x710] sm:$0xf0]  ;;  %v3624_v29 = vor.u32 %v4321_v19, %v3621_v22  ;;  %v4152_v3 = vld [vmem:[#allocation8 + $0xb4] sm:$0xf0] }
  0xaf   :  { %2488 = vmatpush.bf16.msra.mxu0 %v3672_v48  ;;  %2502 = vmatpush.bf16.msra.mxu1 %v3800_v49  ;;  %v4385_v28 = vld [vmem:[#allocation8 + $0x804] sm:$0xf]  ;;  %v3877_v31 = vld [vmem:[#allocation8 + $0x810] sm:$0xf0]  ;;  %v3752_v36 = vor.u32 %v4353_v51, %v3749_v53  ;;  %v3356_v48 = vor.u32 %v4256_v40, %v3355_v39  ;;  %v4188_v49 = vld [vmem:[#allocation8 + $0x1d4] sm:$0xf0] }
  0xb0   :  { %v4417_v54 = vld [vmem:[#allocation8 + $0x904] sm:$0xf]  ;;  %v4005_v32 = vld [vmem:[#allocation8 + $0x910] sm:$0xf0]  ;;  %v3880_v38 = vor.u32 %v4385_v28, %v3877_v31  ;;  %v3084_v62 = vor.u32 %v4188_v49, %v3083_v47  ;;  %v3067_v5 = vld [vmem:[#allocation8 + $0x1a8] sm:$0xf] }
  0xb1   :  { %2529 = vmatpush.bf16.msra.mxu3 %v4072_v42  ;;  %v4008_v41 = vor.u32 %v4417_v54, %v4005_v32  ;;  %v2972_v42 = vor.u32 %v4160_v15, %v2971_v61  ;;  %v4216_v58 = vld [vmem:[#allocation8 + $0x2b4] sm:$0xf0]  ;;  %v3323_v59 = vld [vmem:[#allocation8 + $0x3a8] sm:$0xf] }
  0xb2   :  { %2516 = vmatpush.bf16.msra.mxu2 %v3928_v50  ;;  %v3211_v50 = vld [vmem:[#allocation8 + $0x2c8] sm:$0xf]  ;;  %v4248_v0 = vld [vmem:[#allocation8 + $0x3b4] sm:$0xf0] }
  0xb3   :  { %2489 = vmatpush.bf16.msra.mxu0 %v3656_v6  ;;  %2503 = vmatpush.bf16.msra.mxu1 %v3784_v9  ;;  %v3212_v1 = vor.u32 %v4220_v52, %v3211_v50  ;;  %v3340_v6 = vor.u32 %v4252_v57, %v3339_v55  ;;  %v4184_v9 = vld [vmem:[#allocation8 + $0x1b4] sm:$0xf0]  ;;  %v2923_v14 = vld [vmem:[#allocation8 + $0x88] sm:$0xf] }
  0xb4   :  { %v3068_v12 = vor.u32 %v4184_v9, %v3067_v5  ;;  %v4148_v8 = vld [vmem:[#allocation8 + $0x94] sm:$0xf0]  ;;  %v3051_v17 = vld [vmem:[#allocation8 + $0x188] sm:$0xf] }
  0xb5   :  { %2530 = vmatpush.bf16.msra.mxu3 %v4056_v60  ;;  %v2956_v60 = vor.u32 %v4156_v46, %v2955_v45  ;;  %v4180_v19 = vld [vmem:[#allocation8 + $0x194] sm:$0xf0]  ;;  %v3179_v22 = vld [vmem:[#allocation8 + $0x288] sm:$0xf]  ;;  %v2924_v53 = vor.u32 %v4148_v8, %v2923_v14 }
  0xb6   :  { %2517 = vmatpush.bf16.msra.mxu2 %v3912_v10  ;;  %v3195_v10 = vld [vmem:[#allocation8 + $0x2a8] sm:$0xf]  ;;  %v4244_v51 = vld [vmem:[#allocation8 + $0x394] sm:$0xf0]  ;;  %v3052_v28 = vor.u32 %v4180_v19, %v3051_v17 }
  0xb7   :  { %2490 = vmatpush.bf16.msra.mxu0 %v3640_v18  ;;  %2504 = vmatpush.bf16.msra.mxu1 %v3768_v23  ;;  %v3196_v13 = vor.u32 %v4216_v58, %v3195_v10  ;;  %v3324_v18 = vor.u32 %v4248_v0, %v3323_v59  ;;  %v4212_v23 = vld [vmem:[#allocation8 + $0x294] sm:$0xf0]  ;;  %v2907_v31 = vld [vmem:[#allocation8 + $0x68] sm:$0xf] }
  0xb8   :  { %v4144_v54 = vld [vmem:[#allocation8 + $0x74] sm:$0xf0]  ;;  %v3035_v32 = vld [vmem:[#allocation8 + $0x168] sm:$0xf] }
  0xb9   :  { %2531 = vmatpush.bf16.msra.mxu3 %v4040_v11  ;;  %v2940_v11 = vor.u32 %v4152_v3, %v2939_v2  ;;  %v4176_v15 = vld [vmem:[#allocation8 + $0x174] sm:$0xf0]  ;;  %v3163_v33 = vld [vmem:[#allocation8 + $0x268] sm:$0xf]  ;;  %v2908_v37 = vor.u32 %v4144_v54, %v2907_v31 }
  0xba   :  { %2518 = vmatpush.bf16.msra.mxu2 %v3896_v27  ;;  %v3307_v27 = vld [vmem:[#allocation8 + $0x388] sm:$0xf]  ;;  %v4240_v35 = vld [vmem:[#allocation8 + $0x374] sm:$0xf0] }
  0xbb   :  { %2491 = vmatpush.bf16.msra.mxu0 %v3624_v29  ;;  %2505 = vmatpush.bf16.msra.mxu1 %v3752_v36  ;;  %v3308_v61 = vor.u32 %v4244_v51, %v3307_v27  ;;  %v4208_v29 = vld [vmem:[#allocation8 + $0x274] sm:$0xf0]  ;;  %v3291_v34 = vld [vmem:[#allocation8 + $0x368] sm:$0xf]  ;;  %v3036_v36 = vor.u32 %v4176_v15, %v3035_v32 }
  0xbc   :  { %v2891_v39 = vld [vmem:[#allocation8 + $0x48] sm:$0xf]  ;;  %v4140_v40 = vld [vmem:[#allocation8 + $0x54] sm:$0xf0] }
  0xbd   :  { %2532 = vmatpush.bf16.msra.mxu3 %v4024_v30  ;;  %v3180_v30 = vor.u32 %v4212_v23, %v3179_v22  ;;  %v4204_v45 = vld [vmem:[#allocation8 + $0x254] sm:$0xf0]  ;;  %v3275_v46 = vld [vmem:[#allocation8 + $0x348] sm:$0xf] }
  0xbe   :  { %2519 = vmatpush.bf16.msra.mxu2 %v3880_v38  ;;  %2492 = vmatmul.bf16.vlgmr.msra.gmra.mxu0 %v4912_v24  ;;  %v3164_v38 = vor.u32 %v4208_v29, %v3163_v33  ;;  %v4236_v47 = vld [vmem:[#allocation8 + $0x354] sm:$0xf0]  ;;  %v2875_v52 = vld [vmem:[#allocation8 + $0x28] sm:$0xf] }
  0xbf   :  { %2540 = vmatpush.bf16.msrb.mxu0 %v2972_v42  ;;  %2554 = vmatpush.bf16.msrb.mxu1 %v3100_v43  ;;  %v3292_v42 = vor.u32 %v4240_v35, %v3291_v34  ;;  %v4172_v43 = vld [vmem:[#allocation8 + $0x154] sm:$0xf0]  ;;  %v3003_v57 = vld [vmem:[#allocation8 + $0x128] sm:$0xf] }
  0xc0   :  { %2506 = vmatmul.bf16.vlgmr.msra.gmra.mxu1 %v4914_v25  ;;  %v4136_v55 = vld [vmem:[#allocation8 + $0x34] sm:$0xf0]  ;;  %v3259_v3 = vld [vmem:[#allocation8 + $0x328] sm:$0xf] }
  0xc1   :  { %2533 = vmatpush.bf16.msra.mxu3 %v4008_v41  ;;  %2520 = vmatmul.bf16.vlgmr.msra.gmra.mxu2 %v4927_v21  ;;  %v3019_v41 = vld [vmem:[#allocation8 + $0x148] sm:$0xf]  ;;  %v4200_v2 = vld [vmem:[#allocation8 + $0x234] sm:$0xf0] }
  0xc2   :  { %2568 = vmatpush.bf16.msrb.mxu2 %v3228_v44  ;;  %v3147_v44 = vld [vmem:[#allocation8 + $0x248] sm:$0xf]  ;;  %v3020_v49 = vor.u32 %v4172_v43, %v3019_v41  ;;  %v4232_v5 = vld [vmem:[#allocation8 + $0x334] sm:$0xf0] }
  0xc3   :  { %2541 = vmatpush.bf16.msrb.mxu0 %v2956_v60  ;;  %2555 = vmatpush.bf16.msrb.mxu1 %v3084_v62  ;;  %v3148_v50 = vor.u32 %v4204_v45, %v3147_v44  ;;  %v3276_v60 = vor.u32 %v4236_v47, %v3275_v46  ;;  %v4168_v62 = vld [vmem:[#allocation8 + $0x134] sm:$0xf0]  ;;  %v2859_v9 = vld [vmem:[#allocation8 + $0x8] sm:$0xf] }
  0xc4   :  { %2534 = vmatmul.bf16.vlgmr.msra.gmra.mxu3 %v4929_v26  ;;  %v4132_v10 = vld [vmem:[#allocation8 + $0x14] sm:$0xf0]  ;;  %v3004_v58 = vor.u32 %v4168_v62, %v3003_v57  ;;  %v2987_v0 = vld [vmem:[#allocation8 + $0x108] sm:$0xf] }
  0xc5   :  { %2582 = vmatpush.bf16.msrb.mxu3 %v3356_v48  ;;  %v2892_v48 = vor.u32 %v4140_v40, %v2891_v39  ;;  %v4196_v14 = vld [vmem:[#allocation8 + $0x214] sm:$0xf0]  ;;  %v3243_v8 = vld [vmem:[#allocation8 + $0x308] sm:$0xf]  ;;  %v2860_v23 = vor.u32 %v4132_v10, %v2859_v9 }
  0xc6   :  { %2569 = vmatpush.bf16.msrb.mxu2 %v3212_v1  ;;  %v3131_v1 = vld [vmem:[#allocation8 + $0x228] sm:$0xf]  ;;  %v4228_v17 = vld [vmem:[#allocation8 + $0x314] sm:$0xf0] }
  0xc7   :  { %2542 = vmatpush.bf16.msrb.mxu0 %v2940_v11  ;;  %2556 = vmatpush.bf16.msrb.mxu1 %v3068_v12  ;;  %v3132_v59 = vor.u32 %v4200_v2, %v3131_v1  ;;  %v4164_v11 = vld [vmem:[#allocation8 + $0x114] sm:$0xf0]  ;;  %v3115_v12 = vld [vmem:[#allocation8 + $0x208] sm:$0xf]  ;;  %v3244_v32 = vor.u32 %v4228_v17, %v3243_v8 }
  0xc8   :  { %v4288_v19 = vld [vmem:[#allocation8 + $0x4f4] sm:$0xf0]  ;;  %v3611_v22 = vld [vmem:[#allocation8 + $0x5e8] sm:$0xf] }
  0xc9   :  { %2583 = vmatpush.bf16.msrb.mxu3 %v3340_v6  ;;  %v2876_v6 = vor.u32 %v4136_v55, %v2875_v52  ;;  %v4320_v27 = vld [vmem:[#allocation8 + $0x5f4] sm:$0xf0]  ;;  %v3739_v51 = vld [vmem:[#allocation8 + $0x6e8] sm:$0xf] }
  0xca   :  { %2570 = vmatpush.bf16.msrb.mxu2 %v3196_v13  ;;  %v3260_v13 = vor.u32 %v4232_v5, %v3259_v3  ;;  %v3867_v31 = vld [vmem:[#allocation8 + $0x7e8] sm:$0xf]  ;;  %v4384_v54 = vld [vmem:[#allocation8 + $0x7f4] sm:$0xf0]  ;;  %v3612_v15 = vor.u32 %v4320_v27, %v3611_v22 }
  0xcb   :  { %2543 = vmatpush.bf16.msrb.mxu0 %v2924_v53  ;;  %2557 = vmatpush.bf16.msrb.mxu1 %v3052_v28  ;;  %v4352_v53 = vld [vmem:[#allocation8 + $0x6f4] sm:$0xf0]  ;;  %v2988_v28 = vor.u32 %v4164_v11, %v2987_v0  ;;  %v3467_v29 = vld [vmem:[#allocation8 + $0x4c8] sm:$0xf] }
  0xcc   :  { %v3740_v33 = vor.u32 %v4352_v53, %v3739_v51  ;;  %v4284_v34 = vld [vmem:[#allocation8 + $0x4d4] sm:$0xf0]  ;;  %v3595_v35 = vld [vmem:[#allocation8 + $0x5c8] sm:$0xf] }
  0xcd   :  { %2584 = vmatpush.bf16.msrb.mxu3 %v3324_v18  ;;  %v3483_v18 = vld [vmem:[#allocation8 + $0x4e8] sm:$0xf]  ;;  %v4348_v39 = vld [vmem:[#allocation8 + $0x6d4] sm:$0xf0]  ;;  %v3468_v44 = vor.u32 %v4284_v34, %v3467_v29 }
  0xce   :  { %2571 = vmatpush.bf16.msrb.mxu2 %v3180_v30  ;;  %v3116_v30 = vor.u32 %v4196_v14, %v3115_v12  ;;  %v3851_v40 = vld [vmem:[#allocation8 + $0x7c8] sm:$0xf]  ;;  %v4380_v41 = vld [vmem:[#allocation8 + $0x7d4] sm:$0xf0] }
  0xcf   :  { %2544 = vmatpush.bf16.msrb.mxu0 %v2908_v37  ;;  %2558 = vmatpush.bf16.msrb.mxu1 %v3036_v36  ;;  %v3868_v37 = vor.u32 %v4384_v54, %v3867_v31  ;;  %v4316_v36 = vld [vmem:[#allocation8 + $0x5d4] sm:$0xf0]  ;;  %v3852_v52 = vor.u32 %v4380_v41, %v3851_v40  ;;  %v3707_v57 = vld [vmem:[#allocation8 + $0x6a8] sm:$0xf] }
  0xd0   :  { %v3596_v46 = vor.u32 %v4316_v36, %v3595_v35  ;;  %v4312_v55 = vld [vmem:[#allocation8 + $0x5b4] sm:$0xf0]  ;;  %v3835_v62 = vld [vmem:[#allocation8 + $0x7a8] sm:$0xf] }
  0xd1   :  { %2585 = vmatpush.bf16.msrb.mxu3 %v3308_v61  ;;  %v3484_v61 = vor.u32 %v4288_v19, %v3483_v18  ;;  %v4376_v1 = vld [vmem:[#allocation8 + $0x7b4] sm:$0xf0]  ;;  %v3435_v9 = vld [vmem:[#allocation8 + $0x488] sm:$0xf] }
  0xd2   :  { %2572 = vmatpush.bf16.msrb.mxu2 %v3164_v38  ;;  %v3723_v38 = vld [vmem:[#allocation8 + $0x6c8] sm:$0xf]  ;;  %v4276_v10 = vld [vmem:[#allocation8 + $0x494] sm:$0xf0] }
  0xd3   :  { %2545 = vmatpush.bf16.msrb.mxu0 %v2892_v48  ;;  %2559 = vmatpush.bf16.msrb.mxu1 %v3020_v49  ;;  %v3724_v47 = vor.u32 %v4348_v39, %v3723_v38  ;;  %v3451_v48 = vld [vmem:[#allocation8 + $0x4a8] sm:$0xf]  ;;  %v4280_v49 = vld [vmem:[#allocation8 + $0x4b4] sm:$0xf0]  ;;  %v3436_v17 = vor.u32 %v4276_v10, %v3435_v9 }
  0xd4   :  { %v3452_v3 = vor.u32 %v4280_v49, %v3451_v48  ;;  %v4308_v0 = vld [vmem:[#allocation8 + $0x594] sm:$0xf0]  ;;  %v3691_v11 = vld [vmem:[#allocation8 + $0x688] sm:$0xf] }
  0xd5   :  { %2586 = vmatpush.bf16.msrb.mxu3 %v3292_v42  ;;  %v4943_v42 = vld [vmem:[#allocation10] sm:$0xf]  ;;  %v2269_v43 = vpop.f32.mrf.mxu0  ;;  %v2283_v45 = vpop.f32.mrf.mxu1  ;;  %v4340_v12 = vld [vmem:[#allocation8 + $0x694] sm:$0xf0]  ;;  %v3547_v51 = vld [vmem:[#allocation8 + $0x568] sm:$0xf] }
  0xd6   :  { %2573 = vmatpush.bf16.msrb.mxu2 %v3148_v50  ;;  %v3579_v50 = vld [vmem:[#allocation8 + $0x5a8] sm:$0xf]  ;;  %v652_v2 = vperm.slane %v4943_v42, 0  ;;  %v4372_v14 = vld [vmem:[#allocation8 + $0x794] sm:$0xf0]  ;;  %v3692_v22 = vor.u32 %v4340_v12, %v3691_v11 }
  0xd7   :  { %2546 = vmatpush.bf16.msrb.mxu0 %v2876_v6  ;;  %2560 = vmatpush.bf16.msrb.mxu1 %v3004_v58  ;;  %v3580_v5 = vor.u32 %v4312_v55, %v3579_v50  ;;  %v3563_v58 = vld [vmem:[#allocation8 + $0x588] sm:$0xf]  ;;  %v4272_v27 = vld [vmem:[#allocation8 + $0x474] sm:$0xf0] }
  0xd8   :  { %v2270_v18 = vadd.f32 %v2269_v43, %v652_v2  ;;  %v3564_v19 = vor.u32 %v4308_v0, %v3563_v58  ;;  %v3675_v31 = vld [vmem:[#allocation8 + $0x668] sm:$0xf]  ;;  %v4336_v54 = vld [vmem:[#allocation8 + $0x674] sm:$0xf0] }
  0xd9   :  { %2587 = vmatpush.bf16.msrb.mxu3 %v3276_v60  ;;  %v4344_v60 = vld [vmem:[#allocation8 + $0x6b4] sm:$0xf0]  ;;  %v3403_v36 = vld [vmem:[#allocation8 + $0x448] sm:$0xf] }
  0xda   :  { %2574 = vmatpush.bf16.msrb.mxu2 %v3132_v59  ;;  %v3708_v6 = vor.u32 %v4344_v60, %v3707_v57  ;;  %v3836_v59 = vor.u32 %v4376_v1, %v3835_v62  ;;  %v2284_v34 = vadd.f32 %v2283_v45, %v2270_v18  ;;  %v4268_v38 = vld [vmem:[#allocation8 + $0x454] sm:$0xf0]  ;;  %v3531_v39 = vld [vmem:[#allocation8 + $0x548] sm:$0xf] }
  0xdb   :  { %2547 = vmatpush.bf16.msrb.mxu0 %v2860_v23  ;;  %2561 = vmatpush.bf16.msrb.mxu1 %v2988_v28  ;;  %v3419_v23 = vld [vmem:[#allocation8 + $0x468] sm:$0xf]  ;;  %v4300_v41 = vld [vmem:[#allocation8 + $0x554] sm:$0xf0]  ;;  %v3404_v48 = vor.u32 %v4268_v38, %v3403_v36  ;;  %v3101_v36 = vld [vmem:[#allocation8 + $0x1f8] sm:$0xf0] }
  0xdc   :  { %v2297_v8 = vpop.f32.mrf.mxu2  ;;  %v3420_v29 = vor.u32 %v4272_v27, %v3419_v23  ;;  %v3659_v43 = vld [vmem:[#allocation8 + $0x648] sm:$0xf]  ;;  %v3532_v45 = vor.u32 %v4300_v41, %v3531_v39  ;;  %v4264_v55 = vld [vmem:[#allocation8 + $0x434] sm:$0xf0] }
  0xdd   :  { %2588 = vmatpush.bf16.msrb.mxu3 %v3260_v13  ;;  %v3819_v13 = vld [vmem:[#allocation8 + $0x788] sm:$0xf]  ;;  %v2271_v53 = vpop.f32.mrf.mxu0  ;;  %v2298_v49 = vadd.f32 %v2297_v8, %v2284_v34  ;;  %v4296_v1 = vld [vmem:[#allocation8 + $0x534] sm:$0xf0] }
  0xde   :  { %2575 = vmatpush.bf16.msrb.mxu2 %v3116_v30  ;;  %2548 = vmatmul.bf16.vlgmr.msrb.gmra.mxu0 %v4855_v56  ;;  %v3820_v28 = vor.u32 %v4372_v14, %v3819_v13  ;;  %v4304_v30 = vld [vmem:[#allocation8 + $0x574] sm:$0xf0]  ;;  %v3515_v57 = vld [vmem:[#allocation8 + $0x528] sm:$0xf] }
  0xdf   :  { %2596 = vmatpush.bf16.msra.mxu0 %v3484_v61  ;;  %2610 = vmatpush.bf16.msra.mxu1 %v3612_v15  ;;  %v3803_v61 = vld [vmem:[#allocation8 + $0x768] sm:$0xf]  ;;  %v4368_v15 = vld [vmem:[#allocation8 + $0x774] sm:$0xf0]  ;;  %v3548_v35 = vor.u32 %v4304_v30, %v3547_v51  ;;  %v3516_v14 = vor.u32 %v4296_v1, %v3515_v57  ;;  %v3085_v57 = vld [vmem:[#allocation8 + $0x1d8] sm:$0xf0] }
  0xe0   :  { %2562 = vmatmul.bf16.vlgmr.msrb.gmra.mxu1 %v4863_v4  ;;  %v3804_v40 = vor.u32 %v4368_v15, %v3803_v61  ;;  %v3771_v9 = vld [vmem:[#allocation8 + $0x728] sm:$0xf]  ;;  %v4360_v10 = vld [vmem:[#allocation8 + $0x734] sm:$0xf0]  ;;  %v4158_v15 = vld [vmem:[#allocation8 + $0xec] sm:$0xf] }
  0xe1   :  { %2589 = vmatpush.bf16.msrb.mxu3 %v3244_v32  ;;  %2576 = vmatmul.bf16.vlgmr.msrb.gmra.mxu2 %v4873_v63  ;;  %v2285_v32 = vpop.f32.mrf.mxu1  ;;  %v3371_v0 = vld [vmem:[#allocation8 + $0x408] sm:$0xf]  ;;  %v4260_v11 = vld [vmem:[#allocation8 + $0x414] sm:$0xf0]  ;;  %v3772_v23 = vor.u32 %v4360_v10, %v3771_v9 }
  0xe2   :  { %2624 = vmatpush.bf16.msra.mxu2 %v3740_v33  ;;  %v2311_v33 = vpop.f32.mrf.mxu3  ;;  %v4292_v18 = vld [vmem:[#allocation8 + $0x514] sm:$0xf0]  ;;  %v3755_v27 = vld [vmem:[#allocation8 + $0x708] sm:$0xf] }
  0xe3   :  { %2597 = vmatpush.bf16.msra.mxu0 %v3468_v44  ;;  %2611 = vmatpush.bf16.msra.mxu1 %v3596_v46  ;;  %v4332_v44 = vld [vmem:[#allocation8 + $0x654] sm:$0xf0]  ;;  %v3787_v46 = vld [vmem:[#allocation8 + $0x748] sm:$0xf]  ;;  %v2312_v12 = vadd.f32 %v2311_v33, %v2298_v49  ;;  %v2973_v33 = vld [vmem:[#allocation8 + $0xf8] sm:$0xf0] }
  0xe4   :  { %2590 = vmatmul.bf16.vlgmr.msrb.gmra.mxu3 %v4882_v7  ;;  %v3660_v50 = vor.u32 %v4332_v44, %v3659_v43  ;;  %v2299_v60 = vpop.f32.mrf.mxu2  ;;  %v4356_v51 = vld [vmem:[#allocation8 + $0x714] sm:$0xf0]  ;;  %v2976_v41 = vor.u32 %v4158_v15, %v2973_v33  ;;  %v3979_v43 = vld [vmem:[#allocation8 + $0x8c8] sm:$0xf]  ;;  %v3053_v15 = vld [vmem:[#allocation8 + $0x198] sm:$0xf0] }
  0xe5   :  { %2638 = vmatpush.bf16.msra.mxu3 %v3868_v37  ;;  %v3676_v37 = vor.u32 %v4336_v54, %v3675_v31  ;;  %v2325_v58 = vpop.f32.mrf.mxu0  ;;  %v4416_v30 = vld [vmem:[#allocation8 + $0x8f4] sm:$0xf0]  ;;  %v4123_v31 = vld [vmem:[#allocation8 + $0x9e8] sm:$0xf]  ;;  %v3372_v54 = vor.u32 %v4260_v11, %v3371_v0  ;;  %v3756_v38 = vor.u32 %v4356_v51, %v3755_v27 }
  0xe6   :  { %2625 = vmatpush.bf16.msra.mxu2 %v3724_v47  ;;  %v4364_v47 = vld [vmem:[#allocation8 + $0x754] sm:$0xf0]  ;;  %v3963_v9 = vld [vmem:[#allocation8 + $0x8a8] sm:$0xf] }
  0xe7   :  { %2598 = vmatpush.bf16.msra.mxu0 %v3452_v3  ;;  %2612 = vmatpush.bf16.msra.mxu1 %v3580_v5  ;;  %v3788_v62 = vor.u32 %v4364_v47, %v3787_v46  ;;  %v3643_v3 = vld [vmem:[#allocation8 + $0x628] sm:$0xf]  ;;  %v4328_v5 = vld [vmem:[#allocation8 + $0x634] sm:$0xf0] }
  0xe8   :  { %v3644_v8 = vor.u32 %v4328_v5, %v3643_v3  ;;  %v4448_v61 = vld [vmem:[#allocation8 + $0x9f4] sm:$0xf0]  ;;  %v4107_v46 = vld [vmem:[#allocation8 + $0x9c8] sm:$0xf] }
  0xe9   :  { %2639 = vmatpush.bf16.msra.mxu3 %v3852_v52  ;;  %v3387_v52 = vld [vmem:[#allocation8 + $0x428] sm:$0xf]  ;;  %v2339_v13 = vpop.f32.mrf.mxu1  ;;  %v4412_v44 = vld [vmem:[#allocation8 + $0x8d4] sm:$0xf0] }
  0xea   :  { %2626 = vmatpush.bf16.msra.mxu2 %v3708_v6  ;;  %v2272_v6 = vadd.f32 %v2271_v53, %v652_v2  ;;  %v4324_v2 = vld [vmem:[#allocation8 + $0x614] sm:$0xf0]  ;;  %v4075_v51 = vld [vmem:[#allocation8 + $0x988] sm:$0xf] }
  0xeb   :  { %2599 = vmatpush.bf16.msra.mxu0 %v3436_v17  ;;  %2613 = vmatpush.bf16.msra.mxu1 %v3564_v19  ;;  %v3499_v17 = vld [vmem:[#allocation8 + $0x508] sm:$0xf]  ;;  %v4444_v49 = vld [vmem:[#allocation8 + $0x9d4] sm:$0xf0] }
  0xec   :  { %v3627_v19 = vld [vmem:[#allocation8 + $0x608] sm:$0xf]  ;;  %v2286_v53 = vadd.f32 %v2285_v32, %v2272_v6  ;;  %v3500_v34 = vor.u32 %v4292_v18, %v3499_v17  ;;  %v4124_v32 = vor.u32 %v4448_v61, %v4123_v31  ;;  %v2353_v47 = vpop.f32.mrf.mxu2  ;;  %v4108_v5 = vor.u32 %v4444_v49, %v4107_v46  ;;  %v4408_v10 = vld [vmem:[#allocation8 + $0x8b4] sm:$0xf0]  ;;  %v3069_v17 = vld [vmem:[#allocation8 + $0x1b8] sm:$0xf0] }
  0xed   :  { %2640 = vmatpush.bf16.msra.mxu3 %v3836_v59  ;;  %v3388_v59 = vor.u32 %v4264_v55, %v3387_v52  ;;  %v4186_v55 = vld [vmem:[#allocation8 + $0x1cc] sm:$0xf]  ;;  %v4440_v11 = vld [vmem:[#allocation8 + $0x9b4] sm:$0xf0]  ;;  %v3964_v18 = vor.u32 %v4408_v10, %v3963_v9  ;;  %v2925_v31 = vld [vmem:[#allocation8 + $0x98] sm:$0xf0] }
  0xee   :  { %2627 = vmatpush.bf16.msra.mxu2 %v3692_v22  ;;  %v2313_v22 = vpop.f32.mrf.mxu3  ;;  %v3088_v0 = vor.u32 %v4186_v55, %v3085_v57  ;;  %v4404_v27 = vld [vmem:[#allocation8 + $0x894] sm:$0xf0]  ;;  %v4178_v61 = vld [vmem:[#allocation8 + $0x18c] sm:$0xf]  ;;  %v3915_v57 = vld [vmem:[#allocation8 + $0x848] sm:$0xf] }
  0xef   :  { %2600 = vmatpush.bf16.msra.mxu0 %v3420_v29  ;;  %2614 = vmatpush.bf16.msra.mxu1 %v3548_v35  ;;  %v2326_v29 = vadd.f32 %v2325_v58, %v2312_v12  ;;  %v3628_v35 = vor.u32 %v4324_v2, %v3627_v19  ;;  %v4091_v58 = vld [vmem:[#allocation8 + $0x9a8] sm:$0xf]  ;;  %v4150_v12 = vld [vmem:[#allocation8 + $0xac] sm:$0xf]  ;;  %v2893_v10 = vld [vmem:[#allocation8 + $0x58] sm:$0xf0] }
  0xf0   :  { %v3947_v19 = vld [vmem:[#allocation8 + $0x888] sm:$0xf]  ;;  %v4142_v46 = vld [vmem:[#allocation8 + $0x6c] sm:$0xf] }
  0xf1   :  { %2641 = vmatpush.bf16.msra.mxu3 %v3820_v28  ;;  %v3995_v28 = vld [vmem:[#allocation8 + $0x8e8] sm:$0xf]  ;;  %v2340_v52 = vadd.f32 %v2339_v13, %v2326_v29  ;;  %v2341_v3 = vpop.f32.mrf.mxu1  ;;  %v2941_v13 = vld [vmem:[#allocation8 + $0xb8] sm:$0xf0]  ;;  %v4138_v9 = vld [vmem:[#allocation8 + $0x4c] sm:$0xf] }
  0xf2   :  { %2628 = vmatpush.bf16.msra.mxu2 %v3676_v37  ;;  %v4190_v37 = vld [vmem:[#allocation8 + $0x1ec] sm:$0xf]  ;;  %v3996_v39 = vor.u32 %v4416_v30, %v3995_v28  ;;  %v2944_v2 = vor.u32 %v4150_v12, %v2941_v13 }
  0xf3   :  { %2601 = vmatpush.bf16.msra.mxu0 %v3404_v48  ;;  %2615 = vmatpush.bf16.msra.mxu1 %v3532_v45  ;;  %v3104_v48 = vor.u32 %v4190_v37, %v3101_v36  ;;  %v4154_v45 = vld [vmem:[#allocation8 + $0xcc] sm:$0xf] }
  0xf4   :  { %v4146_v30 = vld [vmem:[#allocation8 + $0x8c] sm:$0xf]  ;;  %v2355_v33 = vpop.f32.mrf.mxu2 }
  0xf5   :  { %2642 = vmatpush.bf16.msra.mxu3 %v3804_v40  ;;  %v2300_v40 = vadd.f32 %v2299_v60, %v2286_v53  ;;  %v3980_v60 = vor.u32 %v4412_v44, %v3979_v43  ;;  %v4436_v53 = vld [vmem:[#allocation8 + $0x994] sm:$0xf0]  ;;  %v3056_v43 = vor.u32 %v4178_v61, %v3053_v15  ;;  %v4011_v15 = vld [vmem:[#allocation8 + $0x908] sm:$0xf] }
  0xf6   :  { %2629 = vmatpush.bf16.msra.mxu2 %v3660_v50  ;;  %v2957_v50 = vld [vmem:[#allocation8 + $0xd8] sm:$0xf0]  ;;  %v4432_v44 = vld [vmem:[#allocation8 + $0x974] sm:$0xf0] }
  0xf7   :  { %2602 = vmatpush.bf16.msra.mxu0 %v3388_v59  ;;  %2616 = vmatpush.bf16.msra.mxu1 %v3516_v14  ;;  %v2314_v1 = vadd.f32 %v2313_v22, %v2300_v40  ;;  %v2960_v6 = vor.u32 %v4154_v45, %v2957_v50  ;;  %v2367_v59 = vpop.f32.mrf.mxu3  ;;  %v2354_v14 = vadd.f32 %v2353_v47, %v2340_v52  ;;  %v3931_v40 = vld [vmem:[#allocation8 + $0x868] sm:$0xf]  ;;  %v2909_v47 = vld [vmem:[#allocation8 + $0x78] sm:$0xf0]  ;;  %v4174_v45 = vld [vmem:[#allocation8 + $0x16c] sm:$0xf] }
  0xf8   :  { %v3037_v50 = vld [vmem:[#allocation8 + $0x178] sm:$0xf0]  ;;  %v4388_v61 = vld [vmem:[#allocation8 + $0x814] sm:$0xf0] }
  0xf9   :  { %2643 = vmatpush.bf16.msra.mxu3 %v3788_v62  ;;  %v2327_v62 = vpop.f32.mrf.mxu0 }
  0xfa   :  { %2630 = vmatpush.bf16.msra.mxu2 %v3644_v8  ;;  %v4182_v8 = vld [vmem:[#allocation8 + $0x1ac] sm:$0xf]  ;;  %v2328_v22 = vadd.f32 %v2327_v62, %v2314_v1  ;;  %v4396_v1 = vld [vmem:[#allocation8 + $0x854] sm:$0xf0] }
  0xfb   :  { %2603 = vmatpush.bf16.msra.mxu0 %v3372_v54  ;;  %2617 = vmatpush.bf16.msra.mxu1 %v3500_v34  ;;  %v3072_v28 = vor.u32 %v4182_v8, %v3069_v17  ;;  %v2368_v54 = vadd.f32 %v2367_v59, %v2354_v14  ;;  %v3948_v34 = vor.u32 %v4404_v27, %v3947_v19  ;;  %v4170_v59 = vld [vmem:[#allocation8 + $0x14c] sm:$0xf]  ;;  %v4392_v19 = vld [vmem:[#allocation8 + $0x834] sm:$0xf0] }
  0xfc   :  { %v2342_v37 = vadd.f32 %v2341_v3, %v2328_v22  ;;  %v4043_v3 = vld [vmem:[#allocation8 + $0x948] sm:$0xf]  ;;  %v3916_v12 = vor.u32 %v4396_v1, %v3915_v57  ;;  %v2896_v8 = vor.u32 %v4138_v9, %v2893_v10  ;;  %v4134_v27 = vld [vmem:[#allocation8 + $0x2c] sm:$0xf]  ;;  %v3213_v1 = vld [vmem:[#allocation8 + $0x2d8] sm:$0xf0] }
  0xfd   :  { %2644 = vmatpush.bf16.msra.mxu3 %v3772_v23  ;;  %v4092_v23 = vor.u32 %v4440_v11, %v4091_v58  ;;  %v4027_v22 = vld [vmem:[#allocation8 + $0x928] sm:$0xf]  ;;  %v4282_v9 = vld [vmem:[#allocation8 + $0x4cc] sm:$0xf]  ;;  %v3469_v10 = vld [vmem:[#allocation8 + $0x4d8] sm:$0xf0] }
  0xfe   :  { %2631 = vmatpush.bf16.msra.mxu2 %v3628_v35  ;;  %2604 = vmatmul.bf16.vlgmr.msra.gmra.mxu0 %v4908_v16  ;;  %v4076_v35 = vor.u32 %v4436_v53, %v4075_v51  ;;  %v2877_v51 = vld [vmem:[#allocation8 + $0x38] sm:$0xf0] }
  0xff   :  { %2652 = vmatpush.bf16.msrb.mxu0 %v3996_v39  ;;  %2666 = vmatpush.bf16.msrb.mxu1 %v4124_v32  ;;  %v2395_v39 = vpop.f32.mrf.mxu1  ;;  %v4400_v32 = vld [vmem:[#allocation8 + $0x874] sm:$0xf0]  ;;  %v2369_v52 = vpop.f32.mrf.mxu3 }
 0x100   :  { %2618 = vmatmul.bf16.vlgmr.msra.gmra.mxu1 %v4910_v20  ;;  %v3932_v55 = vor.u32 %v4400_v32, %v3931_v40  ;;  %v4222_v40 = vld [vmem:[#allocation8 + $0x2ec] sm:$0xf]  ;;  %v3229_v32 = vld [vmem:[#allocation8 + $0x2f8] sm:$0xf0] }
 0x101   :  { %2645 = vmatpush.bf16.msra.mxu3 %v3756_v38  ;;  %2632 = vmatmul.bf16.vlgmr.msra.gmra.mxu2 %v4912_v24  ;;  %v2381_v29 = vpop.f32.mrf.mxu0  ;;  %v2928_v38 = vor.u32 %v4146_v30, %v2925_v31  ;;  %v3005_v30 = vld [vmem:[#allocation8 + $0x138] sm:$0xf0] }
 0x102   :  { %2680 = vmatpush.bf16.msrb.mxu2 %v2976_v41  ;;  %v2382_v36 = vadd.f32 %v2381_v29, %v2368_v54  ;;  %v4059_v41 = vld [vmem:[#allocation8 + $0x968] sm:$0xf]  ;;  %v2880_v29 = vor.u32 %v4134_v27, %v2877_v51 }
 0x103   :  { %2653 = vmatpush.bf16.msrb.mxu0 %v3980_v60  ;;  %2667 = vmatpush.bf16.msrb.mxu1 %v4108_v5  ;;  %v4060_v62 = vor.u32 %v4432_v44, %v4059_v41  ;;  %v2912_v60 = vor.u32 %v4142_v46, %v2909_v47  ;;  %v3040_v5 = vor.u32 %v4174_v45, %v3037_v50  ;;  %v3883_v54 = vld [vmem:[#allocation8 + $0x808] sm:$0xf]  ;;  %v4254_v41 = vld [vmem:[#allocation8 + $0x3ec] sm:$0xf]  ;;  %v3357_v44 = vld [vmem:[#allocation8 + $0x3f8] sm:$0xf0] }
 0x104   :  { %2646 = vmatmul.bf16.vlgmr.msra.gmra.mxu3 %v4914_v25  ;;  %v2396_v49 = vadd.f32 %v2395_v39, %v2382_v36  ;;  %v2861_v36 = vld [vmem:[#allocation8 + $0x18] sm:$0xf0]  ;;  %v4286_v46 = vld [vmem:[#allocation8 + $0x4ec] sm:$0xf]  ;;  %v3360_v57 = vor.u32 %v4254_v41, %v3357_v44 }
 0x105   :  { %2694 = vmatpush.bf16.msrb.mxu3 %v3104_v48  ;;  %v2356_v48 = vadd.f32 %v2355_v33, %v2342_v37  ;;  %v2989_v39 = vld [vmem:[#allocation8 + $0x118] sm:$0xf0]  ;;  %v4318_v45 = vld [vmem:[#allocation8 + $0x5ec] sm:$0xf] }
 0x106   :  { %2681 = vmatpush.bf16.msrb.mxu2 %v2960_v6  ;;  %2820 = vst [vmem:[#allocation11] sm:$0xff] %v2396_v49  ;;  %v4428_v6 = vld [vmem:[#allocation8 + $0x954] sm:$0xf0]  ;;  %v3485_v47 = vld [vmem:[#allocation8 + $0x4f8] sm:$0xf0] }
 0x107   :  { %2654 = vmatpush.bf16.msrb.mxu0 %v3964_v18  ;;  %2668 = vmatpush.bf16.msrb.mxu1 %v4092_v23  ;;  %v2370_v58 = vadd.f32 %v2369_v52, %v2356_v48  ;;  %v4044_v14 = vor.u32 %v4428_v6, %v4043_v3  ;;  %v2397_v17 = vpop.f32.mrf.mxu1  ;;  %v3899_v18 = vld [vmem:[#allocation8 + $0x828] sm:$0xf]  ;;  %v3613_v50 = vld [vmem:[#allocation8 + $0x5f8] sm:$0xf0]  ;;  %v4250_v3 = vld [vmem:[#allocation8 + $0x3cc] sm:$0xf] }
 0x108   :  { %v3900_v31 = vor.u32 %v4392_v19, %v3899_v18  ;;  %v3341_v6 = vld [vmem:[#allocation8 + $0x3d8] sm:$0xf0]  ;;  %v4278_v19 = vld [vmem:[#allocation8 + $0x4ac] sm:$0xf] }
 0x109   :  { %2695 = vmatpush.bf16.msrb.mxu3 %v3088_v0  ;;  %v3021_v0 = vld [vmem:[#allocation8 + $0x158] sm:$0xf0]  ;;  %v2383_v11 = vpop.f32.mrf.mxu0 }
 0x10a   :  { %2682 = vmatpush.bf16.msrb.mxu2 %v2944_v2  ;;  %v2384_v13 = vadd.f32 %v2383_v11, %v2370_v58  ;;  %v3024_v23 = vor.u32 %v4170_v59, %v3021_v0  ;;  %v4424_v2 = vld [vmem:[#allocation8 + $0x934] sm:$0xf0]  ;;  %v4314_v58 = vld [vmem:[#allocation8 + $0x5cc] sm:$0xf]  ;;  %v3597_v59 = vld [vmem:[#allocation8 + $0x5d8] sm:$0xf0]  ;;  %v3344_v11 = vor.u32 %v4250_v3, %v3341_v6 }
 0x10b   :  { %2655 = vmatpush.bf16.msrb.mxu0 %v3948_v34  ;;  %2669 = vmatpush.bf16.msrb.mxu1 %v4076_v35  ;;  %v4028_v33 = vor.u32 %v4424_v2, %v4027_v22  ;;  %v4420_v34 = vld [vmem:[#allocation8 + $0x914] sm:$0xf0]  ;;  %v4130_v35 = vld [vmem:[#allocation8 + $0xc] sm:$0xf]  ;;  %v3325_v18 = vld [vmem:[#allocation8 + $0x3b8] sm:$0xf0] }
 0x10c   :  { %v2398_v53 = vadd.f32 %v2397_v17, %v2384_v13  ;;  %v4012_v48 = vor.u32 %v4420_v34, %v4011_v15  ;;  %v2864_v49 = vor.u32 %v4130_v35, %v2861_v36  ;;  %v4214_v13 = vld [vmem:[#allocation8 + $0x2ac] sm:$0xf]  ;;  %v3600_v17 = vor.u32 %v4314_v58, %v3597_v59  ;;  %v3453_v22 = vld [vmem:[#allocation8 + $0x4b8] sm:$0xf0]  ;;  %v2423_v34 = vpop.f32.mrf.mxu3 }
 0x10d   :  { %2696 = vmatpush.bf16.msrb.mxu3 %v3072_v28  ;;  %v4166_v28 = vld [vmem:[#allocation8 + $0x12c] sm:$0xf]  ;;  %v3581_v2 = vld [vmem:[#allocation8 + $0x5b8] sm:$0xf0] }
 0x10e   :  { %2683 = vmatpush.bf16.msrb.mxu2 %v2928_v38  ;;  %2824 = vst [vmem:[#allocation11 + $0x20] sm:$0xff] %v2398_v53  ;;  %v3008_v37 = vor.u32 %v4166_v28, %v3005_v30  ;;  %v4162_v38 = vld [vmem:[#allocation8 + $0x10c] sm:$0xf]  ;;  %v3456_v53 = vor.u32 %v4278_v19, %v3453_v22  ;;  %v3181_v30 = vld [vmem:[#allocation8 + $0x298] sm:$0xf0] }
 0x10f   :  { %2656 = vmatpush.bf16.msrb.mxu0 %v3932_v55  ;;  %2670 = vmatpush.bf16.msrb.mxu1 %v4060_v62  ;;  %v2992_v52 = vor.u32 %v4162_v38, %v2989_v39  ;;  %v3232_v55 = vor.u32 %v4222_v40, %v3229_v32  ;;  %v3488_v62 = vor.u32 %v4286_v46, %v3485_v47  ;;  %v4210_v28 = vld [vmem:[#allocation8 + $0x28c] sm:$0xf]  ;;  %v3309_v15 = vld [vmem:[#allocation8 + $0x398] sm:$0xf0] }
 0x110   :  { %v4306_v35 = vld [vmem:[#allocation8 + $0x58c] sm:$0xf]  ;;  %v3165_v39 = vld [vmem:[#allocation8 + $0x278] sm:$0xf0] }
 0x111   :  { %2697 = vmatpush.bf16.msrb.mxu3 %v3056_v43  ;;  %v3884_v43 = vor.u32 %v4388_v61, %v3883_v54  ;;  %v2409_v54 = vpop.f32.mrf.mxu2  ;;  %v4206_v38 = vld [vmem:[#allocation8 + $0x26c] sm:$0xf]  ;;  %v3293_v41 = vld [vmem:[#allocation8 + $0x378] sm:$0xf0] }
 0x112   :  { %2684 = vmatpush.bf16.msrb.mxu2 %v2912_v60  ;;  %v4218_v60 = vld [vmem:[#allocation8 + $0x2cc] sm:$0xf]  ;;  %v3421_v44 = vld [vmem:[#allocation8 + $0x478] sm:$0xf0] }
 0x113   :  { %2657 = vmatpush.bf16.msrb.mxu0 %v3916_v12  ;;  %2671 = vmatpush.bf16.msrb.mxu1 %v4044_v14  ;;  %v3216_v0 = vor.u32 %v4218_v60, %v3213_v1  ;;  %v3472_v12 = vor.u32 %v4282_v9, %v3469_v10  ;;  %v3197_v14 = vld [vmem:[#allocation8 + $0x2b8] sm:$0xf0]  ;;  %v4238_v40 = vld [vmem:[#allocation8 + $0x36c] sm:$0xf] }
 0x114   :  { %v3200_v27 = vor.u32 %v4214_v13, %v3197_v14  ;;  %v4302_v46 = vld [vmem:[#allocation8 + $0x56c] sm:$0xf]  ;;  %v3549_v47 = vld [vmem:[#allocation8 + $0x578] sm:$0xf0]  ;;  %v4965_v59 = vpop.f32.mrf.mxu3 }
 0x115   :  { %2698 = vmatpush.bf16.msrb.mxu3 %v3040_v5  ;;  %v3616_v5 = vor.u32 %v4318_v45, %v3613_v50  ;;  %v3296_v45 = vor.u32 %v4238_v40, %v3293_v41  ;;  %v3277_v60 = vld [vmem:[#allocation8 + $0x358] sm:$0xf0]  ;;  %v4266_v1 = vld [vmem:[#allocation8 + $0x44c] sm:$0xf] }
 0x116   :  { %2685 = vmatpush.bf16.msrb.mxu2 %v2896_v8  ;;  %v4246_v8 = vld [vmem:[#allocation8 + $0x3ac] sm:$0xf]  ;;  %v3405_v3 = vld [vmem:[#allocation8 + $0x458] sm:$0xf0] }
 0x117   :  { %2658 = vmatpush.bf16.msrb.mxu0 %v3900_v31  ;;  %2672 = vmatpush.bf16.msrb.mxu1 %v4028_v33  ;;  %v3328_v51 = vor.u32 %v4246_v8, %v3325_v18  ;;  %v4242_v31 = vld [vmem:[#allocation8 + $0x38c] sm:$0xf]  ;;  %v3533_v6 = vld [vmem:[#allocation8 + $0x558] sm:$0xf0] }
 0x118   :  { %v4274_v33 = vld [vmem:[#allocation8 + $0x48c] sm:$0xf]  ;;  %v3133_v13 = vld [vmem:[#allocation8 + $0x238] sm:$0xf0] }
 0x119   :  { %2699 = vmatpush.bf16.msrb.mxu3 %v3024_v23  ;;  %v4310_v23 = vld [vmem:[#allocation8 + $0x5ac] sm:$0xf]  ;;  %v2411_v9 = vpop.f32.mrf.mxu2  ;;  %v3389_v19 = vld [vmem:[#allocation8 + $0x438] sm:$0xf0] }
 0x11a   :  { %2686 = vmatpush.bf16.msrb.mxu2 %v2880_v29  ;;  %v3584_v61 = vor.u32 %v4310_v23, %v3581_v2  ;;  %v3437_v29 = vld [vmem:[#allocation8 + $0x498] sm:$0xf0]  ;;  %v4230_v14 = vld [vmem:[#allocation8 + $0x32c] sm:$0xf] }
 0x11b   :  { %2659 = vmatpush.bf16.msrb.mxu0 %v3884_v43  ;;  %2673 = vmatpush.bf16.msrb.mxu1 %v4012_v48  ;;  %v3440_v36 = vor.u32 %v4274_v33, %v3437_v29  ;;  %v4270_v43 = vld [vmem:[#allocation8 + $0x46c] sm:$0xf]  ;;  %v653_v48 = vperm.slane %v4943_v42, 1  ;;  %v2437_v22 = vpop.f32.mrf.mxu0  ;;  %v3517_v2 = vld [vmem:[#allocation8 + $0x538] sm:$0xf0] }
 0x11c   :  { %v3424_v50 = vor.u32 %v4270_v43, %v3421_v44  ;;  %v4262_v18 = vld [vmem:[#allocation8 + $0x42c] sm:$0xf]  ;;  %v3869_v40 = vld [vmem:[#allocation8 + $0x7f8] sm:$0xf0] }
 0x11d   :  { %2700 = vmatpush.bf16.msrb.mxu3 %v3008_v37  ;;  %v3184_v37 = vor.u32 %v4210_v28, %v3181_v30  ;;  %v2410_v58 = vadd.f32 %v2409_v54, %v653_v48  ;;  %v4294_v23 = vld [vmem:[#allocation8 + $0x52c] sm:$0xf]  ;;  %v3117_v28 = vld [vmem:[#allocation8 + $0x218] sm:$0xf0]  ;;  %v3392_v54 = vor.u32 %v4262_v18, %v3389_v19 }
 0x11e   :  { %2687 = vmatpush.bf16.msrb.mxu2 %v2864_v49  ;;  %2660 = vmatmul.bf16.vlgmr.msrb.gmra.mxu0 %v4927_v21  ;;  %v3168_v49 = vor.u32 %v4206_v38, %v3165_v39  ;;  %v4258_v33 = vld [vmem:[#allocation8 + $0x40c] sm:$0xf]  ;;  %v3520_v29 = vor.u32 %v4294_v23, %v3517_v2  ;;  %v3709_v18 = vld [vmem:[#allocation8 + $0x6b8] sm:$0xf0] }
 0x11f   :  { %2708 = vmatpush.bf16.msra.mxu0 %v3232_v55  ;;  %2722 = vmatpush.bf16.msra.mxu1 %v3360_v57  ;;  %v3149_v55 = vld [vmem:[#allocation8 + $0x258] sm:$0xf0]  ;;  %v4234_v57 = vld [vmem:[#allocation8 + $0x34c] sm:$0xf]  ;;  %v2424_v30 = vadd.f32 %v2423_v34, %v2410_v58 }
 0x120   :  { %2674 = vmatmul.bf16.vlgmr.msrb.gmra.mxu1 %v4929_v26  ;;  %v4382_v38 = vld [vmem:[#allocation8 + $0x7ec] sm:$0xf]  ;;  %v3997_v34 = vld [vmem:[#allocation8 + $0x8f8] sm:$0xf0] }
 0x121   :  { %2701 = vmatpush.bf16.msrb.mxu3 %v2992_v52  ;;  %2688 = vmatmul.bf16.vlgmr.msrb.gmra.mxu2 %v4855_v56  ;;  %v3565_v56 = vld [vmem:[#allocation8 + $0x598] sm:$0xf0]  ;;  %v4202_v52 = vld [vmem:[#allocation8 + $0x24c] sm:$0xf]  ;;  %v2438_v41 = vadd.f32 %v2437_v22, %v2424_v30 }
 0x122   :  { %2736 = vmatpush.bf16.msra.mxu2 %v3488_v62  ;;  %v3568_v32 = vor.u32 %v4306_v35, %v3565_v56  ;;  %v3552_v62 = vor.u32 %v4302_v46, %v3549_v47  ;;  %v3152_v10 = vor.u32 %v4202_v52, %v3149_v55  ;;  %v3373_v35 = vld [vmem:[#allocation8 + $0x418] sm:$0xf0]  ;;  %v4290_v56 = vld [vmem:[#allocation8 + $0x50c] sm:$0xf]  ;;  %v2412_v52 = vadd.f32 %v2411_v9, %v653_v48 }
 0x123   :  { %2709 = vmatpush.bf16.msra.mxu0 %v3216_v0  ;;  %2723 = vmatpush.bf16.msra.mxu1 %v3344_v11  ;;  %v3280_v0 = vor.u32 %v4234_v57, %v3277_v60  ;;  %v3408_v11 = vor.u32 %v4266_v1, %v3405_v3  ;;  %v3376_v44 = vor.u32 %v4258_v33, %v3373_v35  ;;  %v4446_v46 = vld [vmem:[#allocation8 + $0x9ec] sm:$0xf]  ;;  %v4125_v47 = vld [vmem:[#allocation8 + $0x9f8] sm:$0xf0] }
 0x124   :  { %2702 = vmatmul.bf16.vlgmr.msrb.gmra.mxu3 %v4863_v4  ;;  %v3312_v4 = vor.u32 %v4242_v31, %v3309_v15  ;;  %v3245_v15 = vld [vmem:[#allocation8 + $0x318] sm:$0xf0]  ;;  %v3872_v57 = vor.u32 %v4382_v38, %v3869_v40  ;;  %v4346_v60 = vld [vmem:[#allocation8 + $0x6cc] sm:$0xf]  ;;  %v2426_v48 = vadd.f32 %v4965_v59, %v2412_v52 }
 0x125   :  { %2750 = vmatpush.bf16.msra.mxu3 %v3616_v5  ;;  %v4298_v5 = vld [vmem:[#allocation8 + $0x54c] sm:$0xf]  ;;  %v3725_v1 = vld [vmem:[#allocation8 + $0x6d8] sm:$0xf0] }
 0x126   :  { %2737 = vmatpush.bf16.msra.mxu2 %v3472_v12  ;;  %v4198_v12 = vld [vmem:[#allocation8 + $0x22c] sm:$0xf]  ;;  %v3536_v8 = vor.u32 %v4298_v5, %v3533_v6  ;;  %v4128_v5 = vor.u32 %v4446_v46, %v4125_v47  ;;  %v3853_v6 = vld [vmem:[#allocation8 + $0x7d8] sm:$0xf0]  ;;  %v3728_v42 = vor.u32 %v4346_v60, %v3725_v1 }
 0x127   :  { %2710 = vmatpush.bf16.msra.mxu0 %v3200_v27  ;;  %2724 = vmatpush.bf16.msra.mxu1 %v3328_v51  ;;  %v2451_v27 = vpop.f32.mrf.mxu1  ;;  %v3136_v51 = vor.u32 %v4198_v12, %v3133_v13  ;;  %v2479_v55 = vpop.f32.mrf.mxu3  ;;  %v4378_v3 = vld [vmem:[#allocation8 + $0x7cc] sm:$0xf]  ;;  %v3981_v58 = vld [vmem:[#allocation8 + $0x8d8] sm:$0xf0] }
 0x128   :  { %v4442_v12 = vld [vmem:[#allocation8 + $0x9cc] sm:$0xf]  ;;  %v4109_v13 = vld [vmem:[#allocation8 + $0x9d8] sm:$0xf0]  ;;  %v3856_v9 = vor.u32 %v4378_v3, %v3853_v6 }
 0x129   :  { %2751 = vmatpush.bf16.msra.mxu3 %v3600_v17  ;;  %v3261_v17 = vld [vmem:[#allocation8 + $0x338] sm:$0xf0]  ;;  %v4374_v19 = vld [vmem:[#allocation8 + $0x7ac] sm:$0xf]  ;;  %v4112_v22 = vor.u32 %v4442_v12, %v4109_v13 }
 0x12a   :  { %2738 = vmatpush.bf16.msra.mxu2 %v3456_v53  ;;  %v4194_v53 = vld [vmem:[#allocation8 + $0x20c] sm:$0xf]  ;;  %v3264_v31 = vor.u32 %v4230_v14, %v3261_v17  ;;  %v3837_v23 = vld [vmem:[#allocation8 + $0x7b8] sm:$0xf0] }
 0x12b   :  { %2711 = vmatpush.bf16.msra.mxu0 %v3184_v37  ;;  %2725 = vmatpush.bf16.msra.mxu1 %v3312_v4  ;;  %v3501_v37 = vld [vmem:[#allocation8 + $0x518] sm:$0xf0]  ;;  %v4350_v4 = vld [vmem:[#allocation8 + $0x6ec] sm:$0xf]  ;;  %v3120_v39 = vor.u32 %v4194_v53, %v3117_v28 }
 0x12c   :  { %v4342_v17 = vld [vmem:[#allocation8 + $0x6ac] sm:$0xf]  ;;  %v4093_v53 = vld [vmem:[#allocation8 + $0x9b8] sm:$0xf0] }
 0x12d   :  { %2752 = vmatpush.bf16.msra.mxu3 %v3584_v61  ;;  %v4226_v61 = vld [vmem:[#allocation8 + $0x30c] sm:$0xf]  ;;  %v3712_v28 = vor.u32 %v4342_v17, %v3709_v18  ;;  %v3821_v33 = vld [vmem:[#allocation8 + $0x798] sm:$0xf0] }
 0x12e   :  { %2739 = vmatpush.bf16.msra.mxu2 %v3440_v36  ;;  %v3741_v36 = vld [vmem:[#allocation8 + $0x6f8] sm:$0xf0]  ;;  %v3248_v43 = vor.u32 %v4226_v61, %v3245_v15  ;;  %v4406_v2 = vld [vmem:[#allocation8 + $0x8ac] sm:$0xf] }
 0x12f   :  { %2712 = vmatpush.bf16.msra.mxu0 %v3168_v49  ;;  %2726 = vmatpush.bf16.msra.mxu1 %v3296_v45  ;;  %v2465_v49 = vpop.f32.mrf.mxu2  ;;  %v3504_v45 = vor.u32 %v4290_v56, %v3501_v37  ;;  %v2453_v14 = vpop.f32.mrf.mxu1  ;;  %v4438_v59 = vld [vmem:[#allocation8 + $0x9ac] sm:$0xf]  ;;  %v3693_v61 = vld [vmem:[#allocation8 + $0x698] sm:$0xf0] }
 0x130   :  { %v4338_v30 = vld [vmem:[#allocation8 + $0x68c] sm:$0xf]  ;;  %v2481_v37 = vpop.f32.mrf.mxu3  ;;  %v3661_v6 = vld [vmem:[#allocation8 + $0x658] sm:$0xf0] }
 0x131   :  { %2753 = vmatpush.bf16.msra.mxu3 %v3568_v32  ;;  %v4414_v32 = vld [vmem:[#allocation8 + $0x8ec] sm:$0xf]  ;;  %v3696_v38 = vor.u32 %v4338_v30, %v3693_v61  ;;  %v3917_v13 = vld [vmem:[#allocation8 + $0x858] sm:$0xf0] }
 0x132   :  { %2740 = vmatpush.bf16.msra.mxu2 %v3424_v50  ;;  %v3744_v50 = vor.u32 %v4350_v4, %v3741_v36  ;;  %v4370_v15 = vld [vmem:[#allocation8 + $0x78c] sm:$0xf]  ;;  %v4077_v36 = vld [vmem:[#allocation8 + $0x998] sm:$0xf0] }
 0x133   :  { %2713 = vmatpush.bf16.msra.mxu0 %v3152_v10  ;;  %2727 = vmatpush.bf16.msra.mxu1 %v3280_v0  ;;  %v4410_v10 = vld [vmem:[#allocation8 + $0x8cc] sm:$0xf]  ;;  %v2452_v0 = vadd.f32 %v2451_v27, %v2438_v41  ;;  %v3965_v27 = vld [vmem:[#allocation8 + $0x8b8] sm:$0xf0] }
 0x134   :  { %v4402_v35 = vld [vmem:[#allocation8 + $0x88c] sm:$0xf]  ;;  %v4045_v17 = vld [vmem:[#allocation8 + $0x958] sm:$0xf0] }
 0x135   :  { %2754 = vmatpush.bf16.msra.mxu3 %v3552_v62  ;;  %v4000_v62 = vor.u32 %v4414_v32, %v3997_v34  ;;  %v4366_v46 = vld [vmem:[#allocation8 + $0x76c] sm:$0xf]  ;;  %v3773_v30 = vld [vmem:[#allocation8 + $0x738] sm:$0xf0] }
 0x136   :  { %2741 = vmatpush.bf16.msra.mxu2 %v3408_v11  ;;  %v2439_v11 = vpop.f32.mrf.mxu0  ;;  %v4330_v60 = vld [vmem:[#allocation8 + $0x64c] sm:$0xf]  ;;  %v4029_v61 = vld [vmem:[#allocation8 + $0x938] sm:$0xf0] }
 0x137   :  { %2714 = vmatpush.bf16.msra.mxu0 %v3136_v51  ;;  %2728 = vmatpush.bf16.msra.mxu1 %v3264_v31  ;;  %v2466_v51 = vadd.f32 %v2465_v49, %v2452_v0  ;;  %v2440_v31 = vadd.f32 %v2439_v11, %v2426_v48  ;;  %v3805_v49 = vld [vmem:[#allocation8 + $0x778] sm:$0xf0]  ;;  %v4394_v12 = vld [vmem:[#allocation8 + $0x84c] sm:$0xf]  ;;  %v3664_v18 = vor.u32 %v4330_v60, %v3661_v6 }
 0x138   :  { %v3808_v3 = vor.u32 %v4366_v46, %v3805_v49 }
 0x139   :  { %2755 = vmatpush.bf16.msra.mxu3 %v3536_v8  ;;  %v3984_v8 = vor.u32 %v4410_v10, %v3981_v58  ;;  %v2480_v56 = vadd.f32 %v2479_v55, %v2466_v51  ;;  %v2454_v32 = vadd.f32 %v2453_v14, %v2440_v31  ;;  %v4430_v55 = vld [vmem:[#allocation8 + $0x96c] sm:$0xf]  ;;  %v3789_v58 = vld [vmem:[#allocation8 + $0x758] sm:$0xf0] }
 0x13a   :  { %2742 = vmatpush.bf16.msra.mxu2 %v3392_v54  ;;  %v3968_v54 = vor.u32 %v4406_v2, %v3965_v27  ;;  %v4362_v10 = vld [vmem:[#allocation8 + $0x74c] sm:$0xf]  ;;  %v3920_v2 = vor.u32 %v4394_v12, %v3917_v13  ;;  %v3645_v51 = vld [vmem:[#allocation8 + $0x638] sm:$0xf0] }
 0x13b   :  { %2715 = vmatpush.bf16.msra.mxu0 %v3120_v39  ;;  %2729 = vmatpush.bf16.msra.mxu1 %v3248_v43  ;;  %v3824_v39 = vor.u32 %v4370_v15, %v3821_v33  ;;  %v4334_v43 = vld [vmem:[#allocation8 + $0x66c] sm:$0xf] }
 0x13c   :  { %v4326_v27 = vld [vmem:[#allocation8 + $0x62c] sm:$0xf] }
 0x13d   :  { %2756 = vmatpush.bf16.msra.mxu3 %v3520_v29  ;;  %v2467_v29 = vpop.f32.mrf.mxu2  ;;  %v2507_v40 = vpop.f32.mrf.mxu1  ;;  %v4390_v31 = vld [vmem:[#allocation8 + $0x82c] sm:$0xf]  ;;  %v3648_v15 = vor.u32 %v4326_v27, %v3645_v51 }
 0x13e   :  { %2743 = vmatpush.bf16.msra.mxu2 %v3376_v44  ;;  %2716 = vmatmul.bf16.vlgmr.msra.gmra.mxu0 %v4873_v63  ;;  %v3840_v63 = vor.u32 %v4374_v19, %v3837_v23  ;;  %v2493_v4 = vpop.f32.mrf.mxu0  ;;  %v3677_v44 = vld [vmem:[#allocation8 + $0x678] sm:$0xf0]  ;;  %v2468_v52 = vadd.f32 %v2467_v29, %v2454_v32  ;;  %v3792_v19 = vor.u32 %v4362_v10, %v3789_v58  ;;  %v4418_v32 = vld [vmem:[#allocation8 + $0x90c] sm:$0xf] }
 0x13f   :  { %2764 = vmatpush.bf16.msrb.mxu0 %v3744_v50  ;;  %2778 = vmatpush.bf16.msrb.mxu1 %v3872_v57  ;;  %v2494_v34 = vadd.f32 %v2493_v4, %v2480_v56  ;;  %v3933_v50 = vld [vmem:[#allocation8 + $0x878] sm:$0xf0]  ;;  %v4354_v56 = vld [vmem:[#allocation8 + $0x70c] sm:$0xf] }
 0x140   :  { %2730 = vmatmul.bf16.vlgmr.msra.gmra.mxu1 %v4882_v7  ;;  %v3949_v7 = vld [vmem:[#allocation8 + $0x898] sm:$0xf0]  ;;  %v2482_v14 = vadd.f32 %v2481_v37, %v2468_v52 }
 0x141   :  { %2757 = vmatpush.bf16.msra.mxu3 %v3504_v45  ;;  %2744 = vmatmul.bf16.vlgmr.msra.gmra.mxu2 %v4908_v16  ;;  %v4096_v16 = vor.u32 %v4438_v59, %v4093_v53  ;;  %v3952_v41 = vor.u32 %v4402_v35, %v3949_v7  ;;  %v4398_v45 = vld [vmem:[#allocation8 + $0x86c] sm:$0xf]  ;;  %v4061_v57 = vld [vmem:[#allocation8 + $0x978] sm:$0xf0]  ;;  %v2508_v1 = vadd.f32 %v2507_v40, %v2494_v34 }
 0x142   :  { %2792 = vmatpush.bf16.msrb.mxu2 %v4000_v62  ;;  %v3680_v62 = vor.u32 %v4334_v43, %v3677_v44  ;;  %v4064_v0 = vor.u32 %v4430_v55, %v4061_v57  ;;  %v4358_v59 = vld [vmem:[#allocation8 + $0x72c] sm:$0xf]  ;;  %v3629_v7 = vld [vmem:[#allocation8 + $0x618] sm:$0xf0] }
 0x143   :  { %2765 = vmatpush.bf16.msrb.mxu0 %v3728_v42  ;;  %2779 = vmatpush.bf16.msrb.mxu1 %v3856_v9  ;;  %v3776_v29 = vor.u32 %v4358_v59, %v3773_v30  ;;  %v4322_v35 = vld [vmem:[#allocation8 + $0x60c] sm:$0xf]  ;;  %v4013_v34 = vld [vmem:[#allocation8 + $0x918] sm:$0xf0] }
 0x144   :  { %2758 = vmatmul.bf16.vlgmr.msra.gmra.mxu3 %v4910_v20  ;;  %v4434_v20 = vld [vmem:[#allocation8 + $0x98c] sm:$0xf] }
 0x145   :  { %2806 = vmatpush.bf16.msrb.mxu3 %v4128_v5  ;;  %v4080_v47 = vor.u32 %v4434_v20, %v4077_v36  ;;  %v3936_v5 = vor.u32 %v4398_v45, %v3933_v50  ;;  %v2521_v11 = vpop.f32.mrf.mxu2  ;;  %v3757_v20 = vld [vmem:[#allocation8 + $0x718] sm:$0xf0]  ;;  %v4386_v36 = vld [vmem:[#allocation8 + $0x80c] sm:$0xf]  ;;  %v4459_v50 = vld [vmem:[#allocation10] sm:$0xf] }
 0x146   :  { %2793 = vmatpush.bf16.msrb.mxu2 %v3984_v8  ;;  %v2522_v42 = vadd.f32 %v2521_v11, %v2508_v1  ;;  %v2495_v48 = vpop.f32.mrf.mxu0  ;;  %v4426_v8 = vld [vmem:[#allocation8 + $0x94c] sm:$0xf]  ;;  %v3760_v44 = vor.u32 %v4354_v56, %v3757_v20  ;;  %v654_v52 = vperm.slane %v4459_v50, 2 }
 0x147   :  { %2766 = vmatpush.bf16.msrb.mxu0 %v3712_v28  ;;  %2780 = vmatpush.bf16.msrb.mxu1 %v3840_v63  ;;  %v2535_v9 = vpop.f32.mrf.mxu3  ;;  %v4048_v53 = vor.u32 %v4426_v8, %v4045_v17  ;;  %v2509_v28 = vpop.f32.mrf.mxu1  ;;  %v3901_v63 = vld [vmem:[#allocation8 + $0x838] sm:$0xf0] }
 0x148   :  { %v2536_v23 = vadd.f32 %v2535_v9, %v2522_v42 }
 0x149   :  { %2807 = vmatpush.bf16.msrb.mxu3 %v4112_v22  ;;  %v2496_v22 = vadd.f32 %v2495_v48, %v2482_v14 }
 0x14a   :  { %2794 = vmatpush.bf16.msrb.mxu2 %v3968_v54  ;;  %2821 = vst [vmem:[#allocation11 + $0x8] sm:$0xff] %v2536_v23  ;;  %v4422_v54 = vld [vmem:[#allocation8 + $0x92c] sm:$0xf] }
 0x14b   :  { %2767 = vmatpush.bf16.msrb.mxu0 %v3696_v38  ;;  %2781 = vmatpush.bf16.msrb.mxu1 %v3824_v39  ;;  %v2510_v33 = vadd.f32 %v2509_v28, %v2496_v22  ;;  %v4032_v37 = vor.u32 %v4422_v54, %v4029_v61  ;;  %v3885_v38 = vld [vmem:[#allocation8 + $0x818] sm:$0xf0] }
 0x14c   :  { %v3888_v46 = vor.u32 %v4386_v36, %v3885_v38 }
 0x14d   :  { %2808 = vmatpush.bf16.msrb.mxu3 %v4096_v16  ;;  %v3904_v16 = vor.u32 %v4390_v31, %v3901_v63  ;;  %v2523_v4 = vpop.f32.mrf.mxu2 }
 0x14e   :  { %2795 = vmatpush.bf16.msrb.mxu2 %v3952_v41  ;;  %v2524_v39 = vadd.f32 %v2523_v4, %v2510_v33  ;;  %v3632_v41 = vor.u32 %v4322_v35, %v3629_v7  ;;  %v655_v33 = vperm.slane %v4459_v50, 3 }
 0x14f   :  { %2768 = vmatpush.bf16.msrb.mxu0 %v3680_v62  ;;  %2782 = vmatpush.bf16.msrb.mxu1 %v3808_v3  ;;  %v2537_v40 = vpop.f32.mrf.mxu3 }
 0x150   :  { %v2538_v43 = vadd.f32 %v2537_v40, %v2524_v39 }
 0x151   :  { %2809 = vmatpush.bf16.msrb.mxu3 %v4080_v47  ;;  %v4016_v47 = vor.u32 %v4418_v32, %v4013_v34 }
 0x152   :  { %2796 = vmatpush.bf16.msrb.mxu2 %v3936_v5  ;;  %2825 = vst [vmem:[#allocation11 + $0x28] sm:$0xff] %v2538_v43 }
 0x153   :  { %2769 = vmatpush.bf16.msrb.mxu0 %v3664_v18  ;;  %2783 = vmatpush.bf16.msrb.mxu1 %v3792_v19 }
 0x155   :  { %2810 = vmatpush.bf16.msrb.mxu3 %v4064_v0 }
 0x156   :  { %2797 = vmatpush.bf16.msrb.mxu2 %v3920_v2 }
 0x157   :  { %2770 = vmatpush.bf16.msrb.mxu0 %v3648_v15  ;;  %2784 = vmatpush.bf16.msrb.mxu1 %v3776_v29 }
 0x159   :  { %2811 = vmatpush.bf16.msrb.mxu3 %v4048_v53 }
 0x15a   :  { %2798 = vmatpush.bf16.msrb.mxu2 %v3904_v16 }
 0x15b   :  { %2771 = vmatpush.bf16.msrb.mxu0 %v3632_v41  ;;  %2785 = vmatpush.bf16.msrb.mxu1 %v3760_v44  ;;  %v2549_v49 = vpop.f32.mrf.mxu0 }
 0x15c   :  { %v2550_v57 = vadd.f32 %v2549_v49, %v654_v52 }
 0x15d   :  { %2812 = vmatpush.bf16.msrb.mxu3 %v4032_v37  ;;  %v2563_v45 = vpop.f32.mrf.mxu1 }
 0x15e   :  { %2799 = vmatpush.bf16.msrb.mxu2 %v3888_v46  ;;  %2772 = vmatmul.bf16.vlgmr.msrb.gmra.mxu0 %v4912_v24  ;;  %v2564_v3 = vadd.f32 %v2563_v45, %v2550_v57 }
 0x15f   :  { %2786 = vmatmul.bf16.vlgmr.msrb.gmra.mxu1 %v4914_v25 }
 0x161   :  { %2813 = vmatpush.bf16.msrb.mxu3 %v4016_v47  ;;  %2800 = vmatmul.bf16.vlgmr.msrb.gmra.mxu2 %v4927_v21 }
 0x163   :  { %v2551_v62 = vpop.f32.mrf.mxu0 }
 0x164   :  { %2814 = vmatmul.bf16.vlgmr.msrb.gmra.mxu3 %v4929_v26  ;;  %v2577_v55 = vpop.f32.mrf.mxu2  ;;  %v2552_v10 = vadd.f32 %v2551_v62, %v654_v52 }
 0x165   :  { %v2565_v60 = vpop.f32.mrf.mxu1  ;;  %v2578_v5 = vadd.f32 %v2577_v55, %v2564_v3 }
 0x166   :  { %v2566_v21 = vadd.f32 %v2565_v60, %v2552_v10 }
 0x167   :  { %v2591_v1 = vpop.f32.mrf.mxu3 }
 0x168   :  { %v2592_v58 = vadd.f32 %v2591_v1, %v2578_v5 }
 0x16c   :  { %v2579_v6 = vpop.f32.mrf.mxu2 }
 0x16d   :  { %v2580_v26 = vadd.f32 %v2579_v6, %v2566_v21 }
 0x16f   :  { %v2593_v0 = vpop.f32.mrf.mxu3 }
 0x170   :  { %v2594_v42 = vadd.f32 %v2593_v0, %v2580_v26 }
 0x17b   :  { %v2605_v24 = vpop.f32.mrf.mxu0 }
 0x17c   :  { %v2606_v11 = vadd.f32 %v2605_v24, %v2592_v58 }
 0x17d   :  { %v2619_v25 = vpop.f32.mrf.mxu1 }
 0x17e   :  { %v2620_v13 = vadd.f32 %v2619_v25, %v2606_v11 }
 0x183   :  { %v2607_v14 = vpop.f32.mrf.mxu0 }
 0x184   :  { %v2633_v12 = vpop.f32.mrf.mxu2  ;;  %v2608_v17 = vadd.f32 %v2607_v14, %v2594_v42 }
 0x185   :  { %v2621_v48 = vpop.f32.mrf.mxu1  ;;  %v2634_v8 = vadd.f32 %v2633_v12, %v2620_v13 }
 0x186   :  { %v2622_v23 = vadd.f32 %v2621_v48, %v2608_v17 }
 0x187   :  { %v2647_v9 = vpop.f32.mrf.mxu3 }
 0x188   :  { %v2648_v18 = vadd.f32 %v2647_v9, %v2634_v8 }
 0x18c   :  { %v2635_v19 = vpop.f32.mrf.mxu2 }
 0x18d   :  { %v2636_v51 = vadd.f32 %v2635_v19, %v2622_v23 }
 0x18f   :  { %v2649_v53 = vpop.f32.mrf.mxu3 }
 0x190   :  { %v2650_v28 = vadd.f32 %v2649_v53, %v2636_v51 }
 0x19b   :  { %v2661_v22 = vpop.f32.mrf.mxu0 }
 0x19c   :  { %v2662_v2 = vadd.f32 %v2661_v22, %v2648_v18 }
 0x19d   :  { %v2675_v27 = vpop.f32.mrf.mxu1 }
 0x19e   :  { %v2676_v59 = vadd.f32 %v2675_v27, %v2662_v2 }
 0x1a0   :  { %2822 = vst [vmem:[#allocation11 + $0x10] sm:$0xff] %v2676_v59 }
 0x1a3   :  { %v2663_v30 = vpop.f32.mrf.mxu0 }
 0x1a4   :  { %v2664_v31 = vadd.f32 %v2663_v30, %v2650_v28  ;;  %v2689_v61 = vpop.f32.mrf.mxu2 }
 0x1a5   :  { %v2677_v63 = vpop.f32.mrf.mxu1  ;;  %v2690_v16 = vadd.f32 %v2689_v61, %v655_v33 }
 0x1a6   :  { %v2678_v54 = vadd.f32 %v2677_v63, %v2664_v31 }
 0x1a7   :  { %v2703_v15 = vpop.f32.mrf.mxu3 }
 0x1a8   :  { %2826 = vst [vmem:[#allocation11 + $0x30] sm:$0xff] %v2678_v54  ;;  %v2704_v56 = vadd.f32 %v2703_v15, %v2690_v16 }
 0x1ac   :  { %v2691_v29 = vpop.f32.mrf.mxu2 }
 0x1ad   :  { %v2692_v36 = vadd.f32 %v2691_v29, %v655_v33 }
 0x1af   :  { %v2705_v35 = vpop.f32.mrf.mxu3 }
 0x1b0   :  { %v2706_v32 = vadd.f32 %v2705_v35, %v2692_v36 }
 0x1bb   :  { %v2717_v7 = vpop.f32.mrf.mxu0 }
 0x1bc   :  { %v2718_v4 = vadd.f32 %v2717_v7, %v2704_v56 }
 0x1bd   :  { %v2731_v37 = vpop.f32.mrf.mxu1 }
 0x1be   :  { %v2732_v39 = vadd.f32 %v2731_v37, %v2718_v4 }
 0x1c3   :  { %v2719_v40 = vpop.f32.mrf.mxu0 }
 0x1c4   :  { %v2745_v20 = vpop.f32.mrf.mxu2  ;;  %v2720_v43 = vadd.f32 %v2719_v40, %v2706_v32 }
 0x1c5   :  { %v2733_v34 = vpop.f32.mrf.mxu1  ;;  %v2746_v41 = vadd.f32 %v2745_v20, %v2732_v39 }
 0x1c6   :  { %v2734_v45 = vadd.f32 %v2733_v34, %v2720_v43 }
 0x1c7   :  { %v2759_v38 = vpop.f32.mrf.mxu3 }
 0x1c8   :  { %v2760_v46 = vadd.f32 %v2759_v38, %v2746_v41 }
 0x1cc   :  { %v2747_v44 = vpop.f32.mrf.mxu2 }
 0x1cd   :  { %v2748_v55 = vadd.f32 %v2747_v44, %v2734_v45 }
 0x1cf   :  { %v2761_v47 = vpop.f32.mrf.mxu3 }
 0x1d0   :  { %v2762_v60 = vadd.f32 %v2761_v47, %v2748_v55 }
 0x1db   :  { %v2773_v49 = vpop.f32.mrf.mxu0 }
 0x1dc   :  { %v2774_v50 = vadd.f32 %v2773_v49, %v2760_v46  ;;  %v2787_v52 = vpop.f32.mrf.mxu1 }
 0x1de   :  { %v2788_v57 = vadd.f32 %v2787_v52, %v2774_v50 }
 0x1e3   :  { %v2775_v5 = vpop.f32.mrf.mxu0 }
 0x1e4   :  { %v2801_v62 = vpop.f32.mrf.mxu2  ;;  %v2776_v10 = vadd.f32 %v2775_v5, %v2762_v60  ;;  %v2789_v24 = vpop.f32.mrf.mxu1 }
 0x1e5   :  { %v2802_v1 = vadd.f32 %v2801_v62, %v2788_v57 }
 0x1e6   :  { %v2790_v58 = vadd.f32 %v2789_v24, %v2776_v10 }
 0x1e7   :  { %v2815_v3 = vpop.f32.mrf.mxu3 }
 0x1e8   :  { %v2816_v6 = vadd.f32 %v2815_v3, %v2802_v1 }
 0x1ea   :  { %2823 = vst [vmem:[#allocation11 + $0x18] sm:$0xff] %v2816_v6 }
 0x1ec   :  { %v2803_v25 = vpop.f32.mrf.mxu2 }
 0x1ed   :  { %v2804_v0 = vadd.f32 %v2803_v25, %v2790_v58 }
 0x1ef   :  { %v2817_v21 = vpop.f32.mrf.mxu3 }
 0x1f0   :  { %v2818_v11 = vadd.f32 %v2817_v21, %v2804_v0 }
 0x1f2   :  { %2827 = vst [vmem:[#allocation11 + $0x38] sm:$0xff] %v2818_v11 }
 0x1f3   :  { %2840 = dma.vmem_to_hbm [thread:$0]  %s2833_s4, 1024, %s2835_s19, [#allocation4], %s4620_s20, %s4620_s20, %s4621_s21  }
 0x1f4   :  { %4610 = dma.done.wait [#allocation4], 1024  }
 0x1f5   :  { %4611 = vsyncadd [#allocation4], 4294966272 }
 0x1f6   :  { %2845 = vsyncpa [#allocation3], 1 }
 0x1f7   :  { %2846 = vsyncpa [#allocation6], 1 }
 0x1f8   :  { %2847 = vsyncpa [#allocation9], 1 }
 0x1f9   :  { %2848 = vsyncpa [#allocation4], 1 }

</bundles_post_ra>
